<compile_context>
chip_gen: v7x
topology: tpu7x:2x2x1
jax: 0.10.0
libtpu: 0.0.40
codegen_flags: <defaults>
</compile_context>

<pallas_src>
import jax
import jax.numpy as jnp
from jax.experimental import pallas as pl
from jax.experimental.pallas import tpu as pltpu


def _se_gate_conv1x1_kernel(s_ref, w_ref, x_ref, o_ref):
    # s_ref: (B, 1, C_in)    pre-sigmoid per-sample channel gates
    # w_ref: (C_out, C_in)   1x1 conv weight (block-invariant, VMEM resident)
    # x_ref: (B, C_in, HW)   per-sample activations, NCHW-native (HW on lanes)
    # o_ref: (B, C_out, HW)
    w = w_ref[...]
    num_samples = x_ref.shape[0]
    for b in range(num_samples):            # static, fully unrolled (B is small)
        gate = jax.nn.sigmoid(s_ref[b])     # (1, C_in)     EUP/VPU, tiny
        w_gated = w * gate                  # (C_out, C_in) gate folded into W
        o_ref[b] = jnp.dot(
            w_gated,
            x_ref[b],
            preferred_element_type=jnp.float32,
            precision=jax.lax.Precision.HIGHEST,
        ).astype(o_ref.dtype)               # MXU: (C_out,C_in)@(C_in,HW)


def se_gate_conv1x1(x_nchw, s_nc11, weight_oi11, *, max_samples_per_step=8):
    """sigmoid(s) * x followed by a 1x1 conv (no bias), NCHW in/out.

    x_nchw:      (N, C_in, H, W)
    s_nc11:      (N, C_in, 1, 1)
    weight_oi11: (C_out, C_in, 1, 1)
    returns      (N, C_out, H, W)
    """
    N, C_in, H, W = x_nchw.shape
    C_out = weight_oi11.shape[0]
    HW = H * W

    # Samples per grid step: collapse the grid entirely for small batches.
    B = min(N, max_samples_per_step)
    N_pad = -(-N // B) * B

    # NCHW-native glue: pure reshapes (no transposes / extra HBM traffic).
    x = x_nchw.reshape(N, C_in, HW)           # (N, C_in, HW)
    s = s_nc11.reshape(N, 1, C_in)            # (N, 1, C_in)
    w = weight_oi11.reshape(C_out, C_in)      # (C_out, C_in)

    if N_pad != N:
        x = jnp.pad(x, ((0, N_pad - N), (0, 0), (0, 0)))
        s = jnp.pad(s, ((0, N_pad - N), (0, 0), (0, 0)))

    out = pl.pallas_call(
        _se_gate_conv1x1_kernel,
        out_shape=jax.ShapeDtypeStruct((N_pad, C_out, HW), x.dtype),
        grid_spec=pltpu.PrefetchScalarGridSpec(
            num_scalar_prefetch=0,
            grid=(N_pad // B,),
            in_specs=[
                pl.BlockSpec((B, 1, C_in), lambda i: (i, 0, 0)),
                pl.BlockSpec((C_out, C_in), lambda i: (0, 0)),   # block-invariant
                pl.BlockSpec((B, C_in, HW), lambda i: (i, 0, 0)),
            ],
            out_specs=pl.BlockSpec((B, C_out, HW), lambda i: (i, 0, 0)),
        ),
        compiler_params=pltpu.CompilerParams(
            dimension_semantics=("parallel",),
        ),
    )(s, w, x)

    return out[:N].reshape(N, C_out, H, W)


if __name__ == "__main__":
    key = jax.random.PRNGKey(0)
    k_x, k_s, k_w = jax.random.split(key, 3)

    # Channel dims fixed by the module (192 -> 40); small batch/spatial.
    N, C_in, H, W = 2, 192, 16, 16
    C_out = 40

    x46 = jax.random.normal(k_x, (N, C_in, H, W), dtype=jnp.float32)
    x50 = jax.random.normal(k_s, (N, C_in, 1, 1), dtype=jnp.float32)
    weight = jax.random.normal(k_w, (C_out, C_in, 1, 1), dtype=jnp.float32)
    weight = weight * (2.0 / C_in) ** 0.5

    out = se_gate_conv1x1(x46, x50, weight)
    out = jax.block_until_ready(out)

    # Pure-JAX reference (sigmoid gate -> 1x1 conv as einsum).
    gated = jax.nn.sigmoid(x50) * x46
    ref = jnp.einsum(
        "nchw,oc->nohw",
        gated,
        weight.reshape(C_out, C_in),
        precision=jax.lax.Precision.HIGHEST,
    )
    assert out.shape == (N, C_out, H, W)
    assert jnp.allclose(out, ref, rtol=1e-4, atol=1e-4)

    print("KERNEL_OK")
</pallas_src>

<mosaic_0001>
module attributes {stable_mosaic.version = 11 : i64} {
  func.func @_se_gate_conv1x1_kernel(%arg0: i32, %arg1: memref<2x1x192xf32, #tpu.memory_space<vmem>>, %arg2: memref<40x192xf32, #tpu.memory_space<vmem>>, %arg3: memref<2x192x256xf32, #tpu.memory_space<vmem>>, %arg4: memref<2x40x256xf32, #tpu.memory_space<vmem>>) attributes {dimension_semantics = [#tpu.dimension_semantics<parallel>], iteration_bounds = array<i64: 1>, scalar_prefetch = 0 : i64, scratch_operands = 0 : i64, tpu.core_type = #tpu.core_type<tc>, window_params = [{transform_indices = @transform_0, window_bounds = array<i64: 2, 1, 192>}, {pipeline_mode = #tpu.pipeline_mode<synchronous>, transform_indices = @transform_1, window_bounds = array<i64: 40, 192>}, {transform_indices = @transform_2, window_bounds = array<i64: 2, 192, 256>}, {transform_indices = @transform_3, window_bounds = array<i64: 2, 40, 256>}]} {
    %c0 = arith.constant 0 : index
    %c0_0 = arith.constant 0 : index
    %0 = vector.load %arg2[%c0, %c0_0] : memref<40x192xf32, #tpu.memory_space<vmem>>, vector<40x192xf32>
    %c0_1 = arith.constant 0 : index
    %c0_2 = arith.constant 0 : index
    %c0_3 = arith.constant 0 : index
    %1 = vector.load %arg1[%c0_1, %c0_2, %c0_3] : memref<2x1x192xf32, #tpu.memory_space<vmem>>, vector<1x1x192xf32>
    %2 = vector.shape_cast %1 : vector<1x1x192xf32> to vector<1x192xf32>
    %3 = arith.negf %2 : vector<1x192xf32>
    %4 = math.exp %3 : vector<1x192xf32>
    %cst = arith.constant 1.000000e+00 : f32
    %5 = vector.broadcast %cst : f32 to vector<1x192xf32>
    %6 = arith.addf %5, %4 : vector<1x192xf32>
    %7 = arith.divf %5, %6 : vector<1x192xf32>
    %8 = vector.broadcast %7 : vector<1x192xf32> to vector<40x192xf32>
    %9 = arith.mulf %0, %8 : vector<40x192xf32>
    %c0_4 = arith.constant 0 : index
    %c0_5 = arith.constant 0 : index
    %c0_6 = arith.constant 0 : index
    %10 = vector.load %arg3[%c0_4, %c0_5, %c0_6] : memref<2x192x256xf32, #tpu.memory_space<vmem>>, vector<1x192x256xf32>
    %11 = vector.shape_cast %10 : vector<1x192x256xf32> to vector<192x256xf32>
    %cst_7 = arith.constant dense<0.000000e+00> : vector<40x256xf32>
    %12 = tpu.matmul %9, %11, %cst_7 {dimension_numbers = #tpu.dot_dimension_numbers<[1], [0], [0], [1], [0, 0, 1, 1], [], []>, precision = #tpu.contract_precision<fp32>} : vector<40x192xf32>, vector<192x256xf32>, vector<40x256xf32> -> vector<40x256xf32>
    %c0_8 = arith.constant 0 : index
    %c0_9 = arith.constant 0 : index
    %c0_10 = arith.constant 0 : index
    %13 = vector.load %arg4[%c0_8, %c0_9, %c0_10] : memref<2x40x256xf32, #tpu.memory_space<vmem>>, vector<1x40x256xf32>
    %14 = vector.shape_cast %13 : vector<1x40x256xf32> to vector<40x256xf32>
    %15 = vector.shape_cast %12 : vector<40x256xf32> to vector<1x40x256xf32>
    tpu.vector_store %arg4[%c0_8, %c0_9, %c0_10], %15 {strides = array<i32>} : memref<2x40x256xf32, #tpu.memory_space<vmem>>, vector<1x40x256xf32>,
    %c1 = arith.constant 1 : index
    %c0_11 = arith.constant 0 : index
    %c0_12 = arith.constant 0 : index
    %16 = vector.load %arg1[%c1, %c0_11, %c0_12] : memref<2x1x192xf32, #tpu.memory_space<vmem>>, vector<1x1x192xf32>
    %17 = vector.shape_cast %16 : vector<1x1x192xf32> to vector<1x192xf32>
    %18 = arith.negf %17 : vector<1x192xf32>
    %19 = math.exp %18 : vector<1x192xf32>
    %cst_13 = arith.constant 1.000000e+00 : f32
    %20 = vector.broadcast %cst_13 : f32 to vector<1x192xf32>
    %21 = arith.addf %20, %19 : vector<1x192xf32>
    %22 = arith.divf %20, %21 : vector<1x192xf32>
    %23 = vector.broadcast %22 : vector<1x192xf32> to vector<40x192xf32>
    %24 = arith.mulf %0, %23 : vector<40x192xf32>
    %c1_14 = arith.constant 1 : index
    %c0_15 = arith.constant 0 : index
    %c0_16 = arith.constant 0 : index
    %25 = vector.load %arg3[%c1_14, %c0_15, %c0_16] : memref<2x192x256xf32, #tpu.memory_space<vmem>>, vector<1x192x256xf32>
    %26 = vector.shape_cast %25 : vector<1x192x256xf32> to vector<192x256xf32>
    %cst_17 = arith.constant dense<0.000000e+00> : vector<40x256xf32>
    %27 = tpu.matmul %24, %26, %cst_17 {dimension_numbers = #tpu.dot_dimension_numbers<[1], [0], [0], [1], [0, 0, 1, 1], [], []>, precision = #tpu.contract_precision<fp32>} : vector<40x192xf32>, vector<192x256xf32>, vector<40x256xf32> -> vector<40x256xf32>
    %c1_18 = arith.constant 1 : index
    %c0_19 = arith.constant 0 : index
    %c0_20 = arith.constant 0 : index
    %28 = vector.load %arg4[%c1_18, %c0_19, %c0_20] : memref<2x40x256xf32, #tpu.memory_space<vmem>>, vector<1x40x256xf32>
    %29 = vector.shape_cast %28 : vector<1x40x256xf32> to vector<40x256xf32>
    %30 = vector.shape_cast %27 : vector<40x256xf32> to vector<1x40x256xf32>
    tpu.vector_store %arg4[%c1_18, %c0_19, %c0_20], %30 {strides = array<i32>} : memref<2x40x256xf32, #tpu.memory_space<vmem>>, vector<1x40x256xf32>,
    return
  }
  func.func @transform_0(%arg0: i32) -> (i32, i32, i32) {
    %c0_i32 = arith.constant 0 : i32
    %c0_i32_0 = arith.constant 0 : i32
    %c0_i32_1 = arith.constant 0 : i32
    return %arg0, %c0_i32, %c0_i32_0 : i32, i32, i32
  }
  func.func @transform_1(%arg0: i32) -> (i32, i32) {
    %c0_i32 = arith.constant 0 : i32
    %c0_i32_0 = arith.constant 0 : i32
    %c0_i32_1 = arith.constant 0 : i32
    return %c0_i32, %c0_i32_0 : i32, i32
  }
  func.func @transform_2(%arg0: i32) -> (i32, i32, i32) {
    %c0_i32 = arith.constant 0 : i32
    %c0_i32_0 = arith.constant 0 : i32
    %c0_i32_1 = arith.constant 0 : i32
    return %arg0, %c0_i32, %c0_i32_0 : i32, i32, i32
  }
  func.func @transform_3(%arg0: i32) -> (i32, i32, i32) {
    %c0_i32 = arith.constant 0 : i32
    %c0_i32_0 = arith.constant 0 : i32
    %c0_i32_1 = arith.constant 0 : i32
    return %arg0, %c0_i32, %c0_i32_0 : i32, i32, i32
  }
}

</mosaic_0001>

<bundles_post_ra>
// kernel: tpu_custom_call.1
= control target key start
LH: loop header
LB: loop body
LE: loop exit
PB: predicated region body
PF: predicated region fallthrough
CT: control target
= control target key end

     0   :  { %8 = vsyncpa [#allocation3], 0  ;;  %s5394_s0 = inlined_call_operand.hbm [shape: f32[2,1,192], index: 0, kind: input, shape index: {}]   ;;  %s5395_s1 = inlined_call_operand.hbm [shape: f32[40,192], index: 1, kind: input, shape index: {}]   ;;  %s5396_s2 = inlined_call_operand.hbm [shape: f32[2,192,256], index: 2, kind: input, shape index: {}]   ;;  %s5397_s3 = inlined_call_operand.hbm [shape: f32[2,40,256], index: 3, kind: output, shape index: {}]  }
   0x1   :  { %9 = vsyncpa [#allocation6], 0 }
   0x2   :  { %10 = vsyncpa [#allocation4], 0  ;;  %s3726_s12 = smov [#allocation5]   ;;  %s3632_s16 = scalar_lea.hbm %s5395_s1, 1280 }
   0x3   :  { %s28_s13 = sshll.u32 %s3726_s12, 4  ;;  %p3633_p0 = scmp.ne.s32.totalorder %s5395_s1, %s3632_s16  ;;  %s29_s13 = int_to_ptr.vmem [resolvable:$true] %s28_s13 }
   0x4   :  { %p3636_p1 = scmp.lt.u32.totalorder %s3632_s16, %s5395_s1 }
   0x6   :  { %p3638_p2 = pnand %p3636_p1, %p3633_p0 }
   0x8   :  { %3641 = shalt.err (!%p3638_p2)
}
   0x9   :  { %s3642_s21 = scalar_lea.vmem %s29_s13, 1280  ;;  %p3647_p4 = scmp.lt.s32.totalorder %s29_s13, %s29_s13 }
   0xa   :  { %p3643_p3 = scmp.ne.s32.totalorder %s29_s13, %s3642_s21  ;;  %p3648_p5 = scmp.lt.s32.totalorder %s3642_s21, %s3642_s21 }
   0xc   :  { %p3649_p6 = por %p3648_p5, %p3647_p4 }
   0xe   :  { %p3650_p7 = pnand %p3649_p6, %p3643_p3 }
  0x10   :  { %3653 = shalt.err (!%p3650_p7)
}
  0x11   :  { %s3727_s22 = smov 256   ;;  %s3728_s23 = smov 16  }
  0x12   :  { %34 = dma.hbm_to_vmem [thread:$0]  %s5395_s1, 1280, %s29_s13, [#allocation6], %s3727_s22, %s3727_s22, %s3728_s23  }
  0x13   :  { %s3729_s26 = smov [#allocation2]   ;;  %s3654_s30 = scalar_lea.hbm %s5394_s0, 64 }
  0x14   :  { %s16_s27 = sshll.u32 %s3729_s26, 4  ;;  %p3655_p8 = scmp.ne.s32.totalorder %s5394_s0, %s3654_s30  ;;  %s17_s27 = int_to_ptr.vmem [resolvable:$true] %s16_s27 }
  0x15   :  { %p3658_p9 = scmp.lt.u32.totalorder %s3654_s30, %s5394_s0 }
  0x17   :  { %p3660_p10 = pnand %p3658_p9, %p3655_p8 }
  0x19   :  { %3663 = shalt.err (!%p3660_p10)
}
  0x1a   :  { %s3664_s8 = scalar_lea.vmem %s17_s27, 64  ;;  %p3669_p12 = scmp.lt.s32.totalorder %s17_s27, %s17_s27 }
  0x1b   :  { %p3665_p11 = scmp.ne.s32.totalorder %s17_s27, %s3664_s8  ;;  %p3670_p13 = scmp.lt.s32.totalorder %s3664_s8, %s3664_s8 }
  0x1d   :  { %p3671_p0 = por %p3670_p13, %p3669_p12 }
  0x1f   :  { %p3672_p1 = pnand %p3671_p0, %p3665_p11 }
  0x21   :  { %3675 = shalt.err (!%p3672_p1)
}
  0x22   :  { %s3730_s1 = smov 32   ;;  %s3731_s9 = smov 2  }
  0x23   :  { %22 = dma.hbm_to_vmem [thread:$0]  %s5394_s0, 64, %s17_s27, [#allocation3], %s3730_s1, %s3730_s1, %s3731_s9  }
  0x24   :  { %s3732_s12 = smov [#allocation7]   ;;  %s3676_s16 = scalar_lea.hbm %s5396_s2, 12288 }
  0x25   :  { %s40_s13 = sshll.u32 %s3732_s12, 4  ;;  %p3677_p2 = scmp.ne.s32.totalorder %s5396_s2, %s3676_s16  ;;  %s41_s13 = int_to_ptr.vmem [resolvable:$true] %s40_s13 }
  0x26   :  { %p3680_p3 = scmp.lt.u32.totalorder %s3676_s16, %s5396_s2 }
  0x28   :  { %p3682_p4 = pnand %p3680_p3, %p3677_p2 }
  0x2a   :  { %3685 = shalt.err (!%p3682_p4)
}
  0x2b   :  { %s3686_s21 = scalar_lea.vmem %s41_s13, 12288  ;;  %p3691_p6 = scmp.lt.s32.totalorder %s41_s13, %s41_s13 }
  0x2c   :  { %p3687_p5 = scmp.ne.s32.totalorder %s41_s13, %s3686_s21  ;;  %p3692_p7 = scmp.lt.s32.totalorder %s3686_s21, %s3686_s21 }
  0x2e   :  { %p3693_p8 = por %p3692_p7, %p3691_p6 }
  0x30   :  { %p3694_p9 = pnand %p3693_p8, %p3687_p5 }
  0x32   :  { %3697 = shalt.err (!%p3694_p9)
}
  0x33   :  { %46 = dma.hbm_to_vmem [thread:$0]  %s5396_s2, 12288, %s41_s13, [#allocation6], %s3727_s22, %s3727_s22, %s3728_s23  }
  0x34   :  { %3720 = dma.done.wait [#allocation3], 64  }
  0x35   :  { %3721 = vsyncadd [#allocation3], 4294967232 }
  0x36   :  { %3722 = dma.done.wait [#allocation6], 13568  }
  0x37   :  { %3723 = vsyncadd [#allocation6], 4294953728  ;;  %v74_v0 = vlaneseq  ;;  %v95_v2 = vld [vmem:[#allocation7 + $0x8] sm:$0xff]  ;;  %v97_v3 = vld [vmem:[#allocation7 + $0x18] sm:$0xff]  ;;  %vm142_vm0 = vcmask 523264   ;;  %s3733_s2 = smov [#allocation8]  }
  0x38   :  { %v1523_v4 = vld [vmem:[#allocation7 + $0x188] sm:$0xff]  ;;  %v158_v7 = vand.u32 4294901760, %v95_v2  ;;  %v162_v8 = vand.u32 4294901760, %v97_v3  ;;  %v1525_v9 = vld [vmem:[#allocation7 + $0x198] sm:$0xff]  ;;  %v94_v11 = vld [vmem:[#allocation7] sm:$0xff]  ;;  %s2925_s25 = sshll.u32 %s3733_s2, 4  ;;  %s2926_s25 = int_to_ptr.vmem [resolvable:$true] %s2925_s25 }
  0x39   :  { %v3796_v1 = vshrl.u32 %v74_v0, 7  ;;  %v1585_v10 = vand.u32 4294901760, %v1523_v4  ;;  %v96_v12 = vld [vmem:[#allocation7 + $0x10] sm:$0xff]  ;;  %v1589_v13 = vand.u32 4294901760, %v1525_v9  ;;  %v160_v14 = vand.u32 4294901760, %v94_v11  ;;  %v1522_v16 = vld [vmem:[#allocation7 + $0x180] sm:$0xff]  ;;  %p3703_p11 = scmp.lt.s32.totalorder %s2926_s25, %s2926_s25 }
  0x3a   :  { %v164_v15 = vand.u32 4294901760, %v96_v12  ;;  %v1524_v17 = vld [vmem:[#allocation7 + $0x190] sm:$0xff]  ;;  %v99_v18 = vld [vmem:[#allocation7 + $0x28] sm:$0xff]  ;;  %v3800_v19 = vpack.c.bf16 %v162_v8, %v158_v7  ;;  %v3802_v20 = vsub.f32 %v95_v2, %v158_v7  ;;  %v3804_v21 = vsub.f32 %v97_v3, %v162_v8  ;;  %v101_v23 = vld [vmem:[#allocation7 + $0x38] sm:$0xff]  ;;  %s3698_s26 = scalar_lea.vmem %s2926_s25, 2560 }
  0x3b   :  { %v3806_v22 = vsub.f32 %v1523_v4, %v1585_v10  ;;  %v1527_v24 = vld [vmem:[#allocation7 + $0x1a8] sm:$0xff]  ;;  %v1529_v25 = vld [vmem:[#allocation7 + $0x1b8] sm:$0xff]  ;;  %v3808_v26 = vpack.c.bf16 %v1589_v13, %v1585_v10  ;;  %v3810_v27 = vsub.f32 %v1525_v9, %v1589_v13  ;;  %v3814_v29 = vsub.f32 %v94_v11, %v160_v14  ;;  %v98_v30 = vld [vmem:[#allocation7 + $0x20] sm:$0xff]  ;;  %p3699_p10 = scmp.ne.s32.totalorder %s2926_s25, %s3698_s26  ;;  %p3704_p12 = scmp.lt.s32.totalorder %s3698_s26, %s3698_s26 }
  0x3c   :  { %5821 = vst [vmem:[#allocation12_spill] sm:$0xff] %v3800_v19  ;;  %v3812_v28 = vpack.c.bf16 %v164_v15, %v160_v14  ;;  %2941 = vmatprep.subr.bf16.mxu0 %v3800_v19  ;;  %v3817_v31 = vsub.f32 %v96_v12, %v164_v15  ;;  %v1587_v32 = vand.u32 4294901760, %v1522_v16  ;;  %v1591_v33 = vand.u32 4294901760, %v1524_v17  ;;  %v100_v35 = vld [vmem:[#allocation7 + $0x30] sm:$0xff]  ;;  %v1526_v40 = vld [vmem:[#allocation7 + $0x1a0] sm:$0xff]  ;;  %v103_v46 = vld [vmem:[#allocation7 + $0x48] sm:$0xff] }
  0x3d   :  { %5822 = vst [vmem:[#allocation13_spill] sm:$0xff] %v3808_v26  ;;  %5823 = vst [vmem:[#allocation14_spill] sm:$0xff] %v3810_v27  ;;  %v166_v34 = vand.u32 4294901760, %v99_v18  ;;  %3229 = vmatprep.subr.bf16.mxu1 %v3808_v26  ;;  %v170_v36 = vand.u32 4294901760, %v101_v23  ;;  %v1593_v37 = vand.u32 4294901760, %v1527_v24  ;;  %v1597_v38 = vand.u32 4294901760, %v1529_v25  ;;  %p3705_p13 = por %p3704_p12, %p3703_p11 }
  0x3e   :  { %5824 = vst [vmem:[#allocation15_spill] sm:$0xff] %v3812_v28  ;;  %5825 = vst [vmem:[#allocation16_spill] sm:$0xff] %v3817_v31  ;;  %2943 = vmatpush1.bf16.msra.mxu0 %v3812_v28  ;;  %v168_v39 = vand.u32 4294901760, %v98_v30  ;;  %v1528_v41 = vld [vmem:[#allocation7 + $0x1b0] sm:$0xff]  ;;  %v3821_v42 = vpack.c.bf16 %v1591_v33, %v1587_v32  ;;  %v3823_v43 = vsub.f32 %v1522_v16, %v1587_v32  ;;  %v105_v47 = vld [vmem:[#allocation7 + $0x58] sm:$0xff]  ;;  %v172_v55 = vand.u32 4294901760, %v100_v35 }
  0x3f   :  { %v3825_v44 = vsub.f32 %v1524_v17, %v1591_v33  ;;  %v3827_v45 = vsub.f32 %v99_v18, %v166_v34  ;;  %v1531_v48 = vld [vmem:[#allocation7 + $0x1c8] sm:$0xff]  ;;  %v3829_v49 = vpack.c.bf16 %v170_v36, %v166_v34  ;;  %v3831_v50 = vsub.f32 %v101_v23, %v170_v36  ;;  %v1533_v53 = vld [vmem:[#allocation7 + $0x1d8] sm:$0xff]  ;;  %v102_v62 = vld [vmem:[#allocation7 + $0x40] sm:$0xff]  ;;  %p3706_p0 = pnand %p3705_p13, %p3699_p10 }
  0x40   :  { %5826 = vst [vmem:[#allocation17_spill] sm:$0xff] %v3821_v42  ;;  %5827 = vst [vmem:[#allocation18_spill] sm:$0xff] %v3823_v43  ;;  %v3833_v51 = vpack.c.bf16 %v1597_v38, %v1593_v37  ;;  %v3835_v52 = vsub.f32 %v1527_v24, %v1593_v37  ;;  %3231 = vmatpush1.bf16.msra.mxu1 %v3821_v42  ;;  %v3838_v54 = vsub.f32 %v1529_v25, %v1597_v38  ;;  %v104_v63 = vld [vmem:[#allocation7 + $0x50] sm:$0xff]  ;;  %v1530_v7 = vld [vmem:[#allocation7 + $0x1c0] sm:$0xff] }
  0x41   :  { %5828 = vst [vmem:[#allocation19_spill] sm:$0xff] %v3825_v44  ;;  %5829 = vst [vmem:[#allocation20_spill] sm:$0xff] %v3827_v45  ;;  %v3840_v56 = vsub.f32 %v98_v30, %v168_v39  ;;  %v1595_v57 = vand.u32 4294901760, %v1526_v40  ;;  %2945 = vmatprep.subr.bf16.mxu0 %v3829_v49  ;;  %v1599_v58 = vand.u32 4294901760, %v1528_v41  ;;  %v174_v59 = vand.u32 4294901760, %v103_v46  ;;  %v1532_v8 = vld [vmem:[#allocation7 + $0x1d0] sm:$0xff] }
  0x42   :  { %5830 = vst [vmem:[#allocation21_spill] sm:$0xff] %v3829_v49  ;;  %5831 = vst [vmem:[#allocation22_spill] sm:$0xff] %v3831_v50  ;;  %3233 = vmatprep.subr.bf16.mxu1 %v3833_v51  ;;  %v178_v60 = vand.u32 4294901760, %v105_v47  ;;  %v1601_v61 = vand.u32 4294901760, %v1531_v48  ;;  %v3844_v0 = vpack.c.bf16 %v172_v55, %v168_v39  ;;  %v3846_v2 = vsub.f32 %v100_v35, %v172_v55  ;;  %v107_v9 = vld [vmem:[#allocation7 + $0x68] sm:$0xff]  ;;  %v109_v14 = vld [vmem:[#allocation7 + $0x78] sm:$0xff] }
  0x43   :  { %5832 = vst [vmem:[#allocation23_spill] sm:$0xff] %v3833_v51  ;;  %5833 = vst [vmem:[#allocation24_spill] sm:$0xff] %v3835_v52  ;;  %v3848_v3 = vsub.f32 %v1526_v40, %v1595_v57  ;;  %v1605_v4 = vand.u32 4294901760, %v1533_v53  ;;  %v3850_v10 = vpack.c.bf16 %v1599_v58, %v1595_v57  ;;  %v3852_v11 = vsub.f32 %v1528_v41, %v1599_v58  ;;  %v1535_v15 = vld [vmem:[#allocation7 + $0x1e8] sm:$0xff]  ;;  %v1537_v16 = vld [vmem:[#allocation7 + $0x1f8] sm:$0xff] }
  0x44   :  { %5834 = vst [vmem:[#allocation25_spill] sm:$0xff] %v3838_v54  ;;  %5835 = vst [vmem:[#allocation26_spill] sm:$0xff] %v3840_v56  ;;  %v3854_v12 = vpack.c.bf16 %v178_v60, %v174_v59  ;;  %v3856_v13 = vsub.f32 %v103_v46, %v174_v59  ;;  %2947 = vmatpush1.bf16.msra.mxu0 %v3844_v0  ;;  %v3859_v17 = vsub.f32 %v105_v47, %v178_v60  ;;  %v106_v38 = vld [vmem:[#allocation7 + $0x60] sm:$0xff]  ;;  %v108_v47 = vld [vmem:[#allocation7 + $0x70] sm:$0xff] }
  0x45   :  { %5836 = vst [vmem:[#allocation27_spill] sm:$0xff] %v3844_v0  ;;  %5837 = vst [vmem:[#allocation28_spill] sm:$0xff] %v3846_v2  ;;  %v3861_v18 = vpack.c.bf16 %v1605_v4, %v1601_v61  ;;  %v3863_v23 = vsub.f32 %v1531_v48, %v1601_v61  ;;  %v3865_v24 = vsub.f32 %v1533_v53, %v1605_v4  ;;  %3235 = vmatpush1.bf16.msra.mxu1 %v3850_v10  ;;  %v1534_v48 = vld [vmem:[#allocation7 + $0x1e0] sm:$0xff]  ;;  %v1536_v53 = vld [vmem:[#allocation7 + $0x1f0] sm:$0xff] }
  0x46   :  { %5838 = vst [vmem:[#allocation29_spill] sm:$0xff] %v3848_v3  ;;  %5839 = vst [vmem:[#allocation30_spill] sm:$0xff] %v3850_v10  ;;  %2949 = vmatprep.subr.bf16.mxu0 %v3854_v12  ;;  %v176_v25 = vand.u32 4294901760, %v102_v62  ;;  %v180_v30 = vand.u32 4294901760, %v104_v63  ;;  %v1603_v32 = vand.u32 4294901760, %v1530_v7  ;;  %v1607_v33 = vand.u32 4294901760, %v1532_v8 }
  0x47   :  { %5840 = vst [vmem:[#allocation31_spill] sm:$0xff] %v3852_v11  ;;  %5841 = vst [vmem:[#allocation32_spill] sm:$0xff] %v3854_v12  ;;  %3237 = vmatprep.subr.bf16.mxu1 %v3861_v18  ;;  %v182_v34 = vand.u32 4294901760, %v107_v9  ;;  %v186_v35 = vand.u32 4294901760, %v109_v14  ;;  %v1609_v36 = vand.u32 4294901760, %v1535_v15  ;;  %v1613_v37 = vand.u32 4294901760, %v1537_v16 }
  0x48   :  { %5842 = vst [vmem:[#allocation33_spill] sm:$0xff] %v3856_v13  ;;  %5843 = vst [vmem:[#allocation34_spill] sm:$0xff] %v3859_v17  ;;  %v3870_v39 = vpack.c.bf16 %v180_v30, %v176_v25  ;;  %v3872_v40 = vsub.f32 %v102_v62, %v176_v25  ;;  %v3874_v41 = vsub.f32 %v104_v63, %v180_v30  ;;  %v111_v60 = vld [vmem:[#allocation7 + $0x88] sm:$0xff]  ;;  %v113_v61 = vld [vmem:[#allocation7 + $0x98] sm:$0xff]  ;;  %v1611_v30 = vand.u32 4294901760, %v1534_v48 }
  0x49   :  { %5844 = vst [vmem:[#allocation35_spill] sm:$0xff] %v3861_v18  ;;  %5845 = vst [vmem:[#allocation36_spill] sm:$0xff] %v3863_v23  ;;  %v3876_v46 = vpack.c.bf16 %v1607_v33, %v1603_v32  ;;  %v3878_v55 = vsub.f32 %v1530_v7, %v1603_v32  ;;  %v3880_v57 = vsub.f32 %v1532_v8, %v1607_v33  ;;  %v1539_v4 = vld [vmem:[#allocation7 + $0x208] sm:$0xff]  ;;  %v184_v7 = vand.u32 4294901760, %v106_v38  ;;  %v1541_v33 = vld [vmem:[#allocation7 + $0x218] sm:$0xff] }
  0x4a   :  { %5846 = vst [vmem:[#allocation37_spill] sm:$0xff] %v3865_v24  ;;  %5847 = vst [vmem:[#allocation38_spill] sm:$0xff] %v3870_v39  ;;  %v3882_v58 = vpack.c.bf16 %v186_v35, %v182_v34  ;;  %v3884_v59 = vsub.f32 %v107_v9, %v182_v34  ;;  %2951 = vmatpush1.bf16.msra.mxu0 %v3870_v39  ;;  %v3888_v62 = vsub.f32 %v109_v14, %v186_v35  ;;  %v110_v5 = vld [vmem:[#allocation7 + $0x80] sm:$0xff]  ;;  %v115_v18 = vld [vmem:[#allocation7 + $0xa8] sm:$0xff] }
  0x4b   :  { %5848 = vst [vmem:[#allocation39_spill] sm:$0xff] %v3872_v40  ;;  %5849 = vst [vmem:[#allocation40_spill] sm:$0xff] %v3874_v41  ;;  %3239 = vmatpush1.bf16.msra.mxu1 %v3876_v46  ;;  %v3890_v63 = vpack.c.bf16 %v1613_v37, %v1609_v36  ;;  %v3892_v25 = vsub.f32 %v1535_v15, %v1609_v36  ;;  %v3895_v8 = vsub.f32 %v1537_v16, %v1613_v37  ;;  %v1538_v15 = vld [vmem:[#allocation7 + $0x200] sm:$0xff]  ;;  %v117_v10 = vld [vmem:[#allocation7 + $0xb8] sm:$0xff] }
  0x4c   :  { %5850 = vst [vmem:[#allocation41_spill] sm:$0xff] %v3876_v46  ;;  %5851 = vst [vmem:[#allocation42_spill] sm:$0xff] %v3878_v55  ;;  %2953 = vmatprep.subr.bf16.mxu0 %v3882_v58  ;;  %v188_v9 = vand.u32 4294901760, %v108_v47  ;;  %v1615_v32 = vand.u32 4294901760, %v1536_v53  ;;  %v3898_v34 = vsub.f32 %v106_v38, %v184_v7  ;;  %v190_v6 = vand.u32 4294901760, %v111_v60  ;;  %v112_v46 = vld [vmem:[#allocation7 + $0x90] sm:$0xff] }
  0x4d   :  { %5852 = vst [vmem:[#allocation43_spill] sm:$0xff] %v3880_v57  ;;  %5853 = vst [vmem:[#allocation44_spill] sm:$0xff] %v3882_v58  ;;  %3241 = vmatprep.subr.bf16.mxu1 %v3890_v63  ;;  %v194_v14 = vand.u32 4294901760, %v113_v61  ;;  %v1617_v35 = vand.u32 4294901760, %v1539_v4  ;;  %v3906_v37 = vsub.f32 %v1534_v48, %v1611_v30  ;;  %v1540_v58 = vld [vmem:[#allocation7 + $0x210] sm:$0xff]  ;;  %v192_v48 = vand.u32 4294901760, %v110_v5 }
  0x4e   :  { %5854 = vst [vmem:[#allocation45_spill] sm:$0xff] %v3884_v59  ;;  %5855 = vst [vmem:[#allocation46_spill] sm:$0xff] %v3888_v62  ;;  %v3900_v36 = vpack.c.bf16 %v188_v9, %v184_v7  ;;  %v3902_v39 = vsub.f32 %v108_v47, %v188_v9  ;;  %v3904_v16 = vpack.c.bf16 %v1615_v32, %v1611_v30  ;;  %v1621_v47 = vand.u32 4294901760, %v1541_v33  ;;  %v1543_v42 = vld [vmem:[#allocation7 + $0x228] sm:$0xff]  ;;  %v1542_v49 = vld [vmem:[#allocation7 + $0x220] sm:$0xff] }
  0x4f   :  { %5856 = vst [vmem:[#allocation47_spill] sm:$0xff] %v3890_v63  ;;  %5857 = vst [vmem:[#allocation48_spill] sm:$0xff] %v3892_v25  ;;  %v3908_v63 = vsub.f32 %v1536_v53, %v1615_v32  ;;  %v3910_v38 = vpack.c.bf16 %v194_v14, %v190_v6  ;;  %v3912_v12 = vsub.f32 %v111_v60, %v190_v6  ;;  %v196_v9 = vand.u32 4294901760, %v112_v46  ;;  %v1545_v6 = vld [vmem:[#allocation7 + $0x238] sm:$0xff] }
  0x50   :  { %5858 = vst [vmem:[#allocation49_spill] sm:$0xff] %v3895_v8  ;;  %5859 = vst [vmem:[#allocation50_spill] sm:$0xff] %v3898_v34  ;;  %v3914_v0 = vsub.f32 %v113_v61, %v194_v14  ;;  %2955 = vmatpush1.bf16.msra.mxu0 %v3900_v36  ;;  %3243 = vmatpush1.bf16.msra.mxu1 %v3904_v16  ;;  %v3918_v7 = vsub.f32 %v1539_v4, %v1617_v35  ;;  %v1619_v30 = vand.u32 4294901760, %v1538_v15  ;;  %v114_v4 = vld [vmem:[#allocation7 + $0xa0] sm:$0xff] }
  0x51   :  { %5860 = vst [vmem:[#allocation51_spill] sm:$0xff] %v3900_v36  ;;  %5861 = vst [vmem:[#allocation52_spill] sm:$0xff] %v3902_v39  ;;  %2957 = vmatprep.subr.bf16.mxu0 %v3910_v38  ;;  %v1623_v53 = vand.u32 4294901760, %v1540_v58  ;;  %v198_v32 = vand.u32 4294901760, %v115_v18  ;;  %v202_v51 = vand.u32 4294901760, %v117_v10  ;;  %v3921_v60 = vpack.c.bf16 %v1621_v47, %v1617_v35  ;;  %v116_v36 = vld [vmem:[#allocation7 + $0xb0] sm:$0xff] }
  0x52   :  { %5862 = vst [vmem:[#allocation53_spill] sm:$0xff] %v3904_v16  ;;  %5863 = vst [vmem:[#allocation54_spill] sm:$0xff] %v3906_v37  ;;  %v3923_v61 = vsub.f32 %v1541_v33, %v1621_v47  ;;  %v3925_v14 = vpack.c.bf16 %v196_v9, %v192_v48  ;;  %v3927_v16 = vsub.f32 %v110_v5, %v192_v48  ;;  %v119_v35 = vld [vmem:[#allocation7 + $0xc8] sm:$0xff]  ;;  %v200_v48 = vand.u32 4294901760, %v114_v4 }
  0x53   :  { %5864 = vst [vmem:[#allocation55_spill] sm:$0xff] %v3908_v63  ;;  %5865 = vst [vmem:[#allocation56_spill] sm:$0xff] %v3910_v38  ;;  %v3929_v28 = vsub.f32 %v112_v46, %v196_v9  ;;  %v3931_v38 = vpack.c.bf16 %v1623_v53, %v1619_v30  ;;  %v3933_v26 = vsub.f32 %v1538_v15, %v1619_v30  ;;  %3245 = vmatprep.subr.bf16.mxu1 %v3921_v60 }
  0x54   :  { %5866 = vst [vmem:[#allocation57_spill] sm:$0xff] %v3912_v12  ;;  %5867 = vst [vmem:[#allocation58_spill] sm:$0xff] %v3914_v0  ;;  %v3935_v19 = vsub.f32 %v1540_v58, %v1623_v53  ;;  %v121_v0 = vld [vmem:[#allocation7 + $0xd8] sm:$0xff]  ;;  %2959 = vmatpush1.bf16.msra.mxu0 %v3925_v14  ;;  %v3939_v5 = vpack.c.bf16 %v202_v51, %v198_v32  ;;  %v3941_v33 = vsub.f32 %v115_v18, %v198_v32 }
  0x55   :  { %5868 = vst [vmem:[#allocation59_spill] sm:$0xff] %v3918_v7  ;;  %5869 = vst [vmem:[#allocation60_spill] sm:$0xff] %v3921_v60  ;;  %v1544_v7 = vld [vmem:[#allocation7 + $0x230] sm:$0xff]  ;;  %v3943_v47 = vsub.f32 %v117_v10, %v202_v51  ;;  %v1625_v46 = vand.u32 4294901760, %v1543_v42  ;;  %3247 = vmatpush1.bf16.msra.mxu1 %v3931_v38  ;;  %v1629_v15 = vand.u32 4294901760, %v1545_v6  ;;  %v204_v58 = vand.u32 4294901760, %v116_v36 }
  0x56   :  { %5870 = vst [vmem:[#allocation61_spill] sm:$0xff] %v3923_v61  ;;  %5871 = vst [vmem:[#allocation62_spill] sm:$0xff] %v3925_v14  ;;  %v1627_v9 = vand.u32 4294901760, %v1542_v49  ;;  %2961 = vmatprep.subr.bf16.mxu0 %v3939_v5  ;;  %v1631_v53 = vand.u32 4294901760, %v1544_v7  ;;  %v206_v60 = vand.u32 4294901760, %v119_v35  ;;  %v210_v14 = vand.u32 4294901760, %v121_v0 }
  0x57   :  { %5872 = vst [vmem:[#allocation63_spill] sm:$0xff] %v3927_v16  ;;  %5873 = vst [vmem:[#allocation64_spill] sm:$0xff] %v3929_v28  ;;  %v3947_v30 = vsub.f32 %v1543_v42, %v1625_v46  ;;  %v3949_v18 = vpack.c.bf16 %v1629_v15, %v1625_v46  ;;  %v3951_v51 = vsub.f32 %v1545_v6, %v1629_v15  ;;  %v1548_v16 = vld [vmem:[#allocation7 + $0x250] sm:$0xff]  ;;  %v123_v46 = vld [vmem:[#allocation7 + $0xe8] sm:$0xff] }
  0x58   :  { %5874 = vst [vmem:[#allocation65_spill] sm:$0xff] %v3931_v38  ;;  %5875 = vst [vmem:[#allocation66_spill] sm:$0xff] %v3933_v26  ;;  %v1549_v26 = vld [vmem:[#allocation7 + $0x258] sm:$0xff]  ;;  %v3953_v10 = vpack.c.bf16 %v204_v58, %v200_v48  ;;  %v3955_v32 = vsub.f32 %v114_v4, %v200_v48  ;;  %v118_v38 = vld [vmem:[#allocation7 + $0xc0] sm:$0xff]  ;;  %v3957_v28 = vsub.f32 %v116_v36, %v204_v58 }
  0x59   :  { %5876 = vst [vmem:[#allocation67_spill] sm:$0xff] %v3935_v19  ;;  %5877 = vst [vmem:[#allocation68_spill] sm:$0xff] %v3939_v5  ;;  %v1547_v19 = vld [vmem:[#allocation7 + $0x248] sm:$0xff]  ;;  %v3959_v42 = vpack.c.bf16 %v1631_v53, %v1627_v9  ;;  %v3961_v5 = vsub.f32 %v1542_v49, %v1627_v9  ;;  %v125_v61 = vld [vmem:[#allocation7 + $0xf8] sm:$0xff]  ;;  %3249 = vmatprep.subr.bf16.mxu1 %v3949_v18  ;;  %v3967_v6 = vpack.c.bf16 %v210_v14, %v206_v60 }
  0x5a   :  { %5878 = vst [vmem:[#allocation69_spill] sm:$0xff] %v3941_v33  ;;  %5879 = vst [vmem:[#allocation70_spill] sm:$0xff] %v3943_v47  ;;  %v120_v47 = vld [vmem:[#allocation7 + $0xd0] sm:$0xff]  ;;  %v1546_v33 = vld [vmem:[#allocation7 + $0x240] sm:$0xff]  ;;  %2963 = vmatpush1.bf16.msra.mxu0 %v3953_v10  ;;  %v3969_v4 = vsub.f32 %v119_v35, %v206_v60  ;;  %v3971_v15 = vsub.f32 %v121_v0, %v210_v14  ;;  %v1633_v36 = vand.u32 4294901760, %v1547_v19  ;;  %v1637_v49 = vand.u32 4294901760, %v1549_v26 }
  0x5b   :  { %5880 = vst [vmem:[#allocation71_spill] sm:$0xff] %v3947_v30  ;;  %5881 = vst [vmem:[#allocation72_spill] sm:$0xff] %v3949_v18  ;;  %v3963_v30 = vsub.f32 %v1544_v7, %v1631_v53  ;;  %3251 = vmatpush1.bf16.msra.mxu1 %v3959_v42  ;;  %v208_v48 = vand.u32 4294901760, %v118_v38  ;;  %v212_v7 = vand.u32 4294901760, %v120_v47  ;;  %v1635_v58 = vand.u32 4294901760, %v1546_v33  ;;  %2965 = vmatprep.subr.bf16.mxu0 %v3967_v6 }
  0x5c   :  { %5882 = vst [vmem:[#allocation73_spill] sm:$0xff] %v3951_v51  ;;  %5883 = vst [vmem:[#allocation74_spill] sm:$0xff] %v3953_v10  ;;  %v3975_v9 = vsub.f32 %v1547_v19, %v1633_v36  ;;  %v1639_v53 = vand.u32 4294901760, %v1548_v16  ;;  %v214_v18 = vand.u32 4294901760, %v123_v46  ;;  %v218_v10 = vand.u32 4294901760, %v125_v61  ;;  %v129_v51 = vld [vmem:[#allocation7 + $0x118] sm:$0xff] }
  0x5d   :  { %5884 = vst [vmem:[#allocation75_spill] sm:$0xff] %v3955_v32  ;;  %5885 = vst [vmem:[#allocation76_spill] sm:$0xff] %v3957_v28  ;;  %v3977_v60 = vpack.c.bf16 %v1637_v49, %v1633_v36  ;;  %v3979_v0 = vsub.f32 %v1549_v26, %v1637_v49  ;;  %v3981_v14 = vpack.c.bf16 %v212_v7, %v208_v48  ;;  %v1552_v32 = vld [vmem:[#allocation7 + $0x270] sm:$0xff]  ;;  %v127_v36 = vld [vmem:[#allocation7 + $0x108] sm:$0xff] }
  0x5e   :  { %5886 = vst [vmem:[#allocation77_spill] sm:$0xff] %v3959_v42  ;;  %5887 = vst [vmem:[#allocation78_spill] sm:$0xff] %v3961_v5  ;;  %v1553_v5 = vld [vmem:[#allocation7 + $0x278] sm:$0xff]  ;;  %v3983_v35 = vsub.f32 %v118_v38, %v208_v48  ;;  %v122_v42 = vld [vmem:[#allocation7 + $0xe0] sm:$0xff]  ;;  %v3985_v28 = vsub.f32 %v120_v47, %v212_v7  ;;  %v3987_v19 = vpack.c.bf16 %v1639_v53, %v1635_v58 }
  0x5f   :  { %5888 = vst [vmem:[#allocation79_spill] sm:$0xff] %v3963_v30  ;;  %5889 = vst [vmem:[#allocation80_spill] sm:$0xff] %v3967_v6  ;;  %v1551_v30 = vld [vmem:[#allocation7 + $0x268] sm:$0xff]  ;;  %v3989_v6 = vsub.f32 %v1546_v33, %v1635_v58  ;;  %3253 = vmatprep.subr.bf16.mxu1 %v3977_v60  ;;  %2967 = vmatpush1.bf16.msra.mxu0 %v3981_v14  ;;  %v3995_v26 = vpack.c.bf16 %v218_v10, %v214_v18  ;;  %v1645_v33 = vand.u32 4294901760, %v1553_v5 }
  0x60   :  { %5890 = vst [vmem:[#allocation81_spill] sm:$0xff] %v3969_v4  ;;  %5891 = vst [vmem:[#allocation82_spill] sm:$0xff] %v3971_v15  ;;  %v124_v15 = vld [vmem:[#allocation7 + $0xf0] sm:$0xff]  ;;  %v1550_v4 = vld [vmem:[#allocation7 + $0x260] sm:$0xff]  ;;  %v3997_v38 = vsub.f32 %v123_v46, %v214_v18  ;;  %v3999_v49 = vsub.f32 %v125_v61, %v218_v10  ;;  %v1641_v47 = vand.u32 4294901760, %v1551_v30  ;;  %3255 = vmatpush1.bf16.msra.mxu1 %v3987_v19  ;;  %v216_v48 = vand.u32 4294901760, %v122_v42 }
  0x61   :  { %5892 = vst [vmem:[#allocation83_spill] sm:$0xff] %v3975_v9  ;;  %5893 = vst [vmem:[#allocation84_spill] sm:$0xff] %v3977_v60  ;;  %v3991_v9 = vsub.f32 %v1548_v16, %v1639_v53  ;;  %v220_v16 = vand.u32 4294901760, %v124_v15  ;;  %v1643_v7 = vand.u32 4294901760, %v1550_v4  ;;  %2969 = vmatprep.subr.bf16.mxu0 %v3995_v26  ;;  %v1647_v53 = vand.u32 4294901760, %v1552_v32 }
  0x62   :  { %5894 = vst [vmem:[#allocation85_spill] sm:$0xff] %v3979_v0  ;;  %5895 = vst [vmem:[#allocation86_spill] sm:$0xff] %v3981_v14  ;;  %v4003_v58 = vsub.f32 %v1551_v30, %v1641_v47  ;;  %v222_v60 = vand.u32 4294901760, %v127_v36  ;;  %v226_v14 = vand.u32 4294901760, %v129_v51  ;;  %v4005_v18 = vpack.c.bf16 %v1645_v33, %v1641_v47  ;;  %v131_v47 = vld [vmem:[#allocation7 + $0x128] sm:$0xff]  ;;  %v133_v0 = vld [vmem:[#allocation7 + $0x138] sm:$0xff] }
  0x63   :  { %5896 = vst [vmem:[#allocation87_spill] sm:$0xff] %v3983_v35  ;;  %5897 = vst [vmem:[#allocation88_spill] sm:$0xff] %v3985_v28  ;;  %v4007_v61 = vsub.f32 %v1553_v5, %v1645_v33  ;;  %v4009_v10 = vpack.c.bf16 %v220_v16, %v216_v48  ;;  %v4011_v46 = vsub.f32 %v122_v42, %v216_v48  ;;  %v1556_v35 = vld [vmem:[#allocation7 + $0x290] sm:$0xff] }
  0x64   :  { %5898 = vst [vmem:[#allocation89_spill] sm:$0xff] %v3987_v19  ;;  %5899 = vst [vmem:[#allocation90_spill] sm:$0xff] %v3989_v6  ;;  %v1557_v6 = vld [vmem:[#allocation7 + $0x298] sm:$0xff]  ;;  %v126_v19 = vld [vmem:[#allocation7 + $0x100] sm:$0xff]  ;;  %v4013_v28 = vsub.f32 %v124_v15, %v220_v16  ;;  %v4015_v30 = vpack.c.bf16 %v1647_v53, %v1643_v7  ;;  %3257 = vmatprep.subr.bf16.mxu1 %v4005_v18  ;;  %v4023_v5 = vpack.c.bf16 %v226_v14, %v222_v60 }
  0x65   :  { %5900 = vst [vmem:[#allocation91_spill] sm:$0xff] %v3991_v9  ;;  %5901 = vst [vmem:[#allocation92_spill] sm:$0xff] %v3995_v26  ;;  %v1555_v9 = vld [vmem:[#allocation7 + $0x288] sm:$0xff]  ;;  %v4017_v26 = vsub.f32 %v1550_v4, %v1643_v7  ;;  %2971 = vmatpush1.bf16.msra.mxu0 %v4009_v10  ;;  %v4025_v42 = vsub.f32 %v127_v36, %v222_v60  ;;  %v4027_v33 = vsub.f32 %v129_v51, %v226_v14 }
  0x66   :  { %5902 = vst [vmem:[#allocation93_spill] sm:$0xff] %v3997_v38  ;;  %5903 = vst [vmem:[#allocation94_spill] sm:$0xff] %v3999_v49  ;;  %v128_v49 = vld [vmem:[#allocation7 + $0x110] sm:$0xff]  ;;  %v1554_v38 = vld [vmem:[#allocation7 + $0x280] sm:$0xff]  ;;  %v1649_v15 = vand.u32 4294901760, %v1555_v9  ;;  %3259 = vmatpush1.bf16.msra.mxu1 %v4015_v30  ;;  %v1653_v4 = vand.u32 4294901760, %v1557_v6  ;;  %2973 = vmatprep.subr.bf16.mxu0 %v4023_v5 }
  0x67   :  { %5904 = vst [vmem:[#allocation95_spill] sm:$0xff] %v4003_v58  ;;  %5905 = vst [vmem:[#allocation96_spill] sm:$0xff] %v4005_v18  ;;  %v4019_v58 = vsub.f32 %v1552_v32, %v1647_v53  ;;  %v224_v48 = vand.u32 4294901760, %v126_v19  ;;  %v228_v32 = vand.u32 4294901760, %v128_v49  ;;  %v1651_v16 = vand.u32 4294901760, %v1554_v38 }
  0x68   :  { %5906 = vst [vmem:[#allocation97_spill] sm:$0xff] %v4007_v61  ;;  %5907 = vst [vmem:[#allocation98_spill] sm:$0xff] %v4009_v10  ;;  %v4031_v7 = vsub.f32 %v1555_v9, %v1649_v15  ;;  %v1655_v53 = vand.u32 4294901760, %v1556_v35  ;;  %v230_v18 = vand.u32 4294901760, %v131_v47  ;;  %v234_v10 = vand.u32 4294901760, %v133_v0  ;;  %v137_v61 = vld [vmem:[#allocation7 + $0x158] sm:$0xff] }
  0x69   :  { %5908 = vst [vmem:[#allocation99_spill] sm:$0xff] %v4011_v46  ;;  %5909 = vst [vmem:[#allocation100_spill] sm:$0xff] %v4013_v28  ;;  %v4033_v60 = vpack.c.bf16 %v1653_v4, %v1649_v15  ;;  %v4035_v51 = vsub.f32 %v1557_v6, %v1653_v4  ;;  %v4037_v14 = vpack.c.bf16 %v228_v32, %v224_v48  ;;  %v1560_v46 = vld [vmem:[#allocation7 + $0x2b0] sm:$0xff]  ;;  %v135_v15 = vld [vmem:[#allocation7 + $0x148] sm:$0xff] }
  0x6a   :  { %5910 = vst [vmem:[#allocation101_spill] sm:$0xff] %v4015_v30  ;;  %5911 = vst [vmem:[#allocation102_spill] sm:$0xff] %v4017_v26  ;;  %v1561_v26 = vld [vmem:[#allocation7 + $0x2b8] sm:$0xff]  ;;  %v4039_v36 = vsub.f32 %v126_v19, %v224_v48  ;;  %v130_v30 = vld [vmem:[#allocation7 + $0x120] sm:$0xff]  ;;  %v4041_v28 = vsub.f32 %v128_v49, %v228_v32  ;;  %v4043_v9 = vpack.c.bf16 %v1655_v53, %v1651_v16 }
  0x6b   :  { %5912 = vst [vmem:[#allocation103_spill] sm:$0xff] %v4019_v58  ;;  %5913 = vst [vmem:[#allocation104_spill] sm:$0xff] %v4023_v5  ;;  %v1559_v58 = vld [vmem:[#allocation7 + $0x2a8] sm:$0xff]  ;;  %v4045_v5 = vsub.f32 %v1554_v38, %v1651_v16  ;;  %3261 = vmatprep.subr.bf16.mxu1 %v4033_v60  ;;  %2975 = vmatpush1.bf16.msra.mxu0 %v4037_v14  ;;  %v4051_v6 = vpack.c.bf16 %v234_v10, %v230_v18  ;;  %v1661_v38 = vand.u32 4294901760, %v1561_v26 }
  0x6c   :  { %5914 = vst [vmem:[#allocation105_spill] sm:$0xff] %v4025_v42  ;;  %5915 = vst [vmem:[#allocation106_spill] sm:$0xff] %v4027_v33  ;;  %v132_v33 = vld [vmem:[#allocation7 + $0x130] sm:$0xff]  ;;  %v1558_v42 = vld [vmem:[#allocation7 + $0x2a0] sm:$0xff]  ;;  %v4053_v19 = vsub.f32 %v131_v47, %v230_v18  ;;  %v4055_v4 = vsub.f32 %v133_v0, %v234_v10  ;;  %v1657_v49 = vand.u32 4294901760, %v1559_v58  ;;  %3263 = vmatpush1.bf16.msra.mxu1 %v4043_v9  ;;  %v232_v48 = vand.u32 4294901760, %v130_v30 }
  0x6d   :  { %5916 = vst [vmem:[#allocation107_spill] sm:$0xff] %v4031_v7  ;;  %5917 = vst [vmem:[#allocation108_spill] sm:$0xff] %v4033_v60  ;;  %v4047_v7 = vsub.f32 %v1556_v35, %v1655_v53  ;;  %v236_v35 = vand.u32 4294901760, %v132_v33  ;;  %v1659_v32 = vand.u32 4294901760, %v1558_v42  ;;  %2977 = vmatprep.subr.bf16.mxu0 %v4051_v6  ;;  %v1663_v53 = vand.u32 4294901760, %v1560_v46 }
  0x6e   :  { %5918 = vst [vmem:[#allocation109_spill] sm:$0xff] %v4035_v51  ;;  %5919 = vst [vmem:[#allocation110_spill] sm:$0xff] %v4037_v14  ;;  %v4059_v16 = vsub.f32 %v1559_v58, %v1657_v49  ;;  %v238_v60 = vand.u32 4294901760, %v135_v15  ;;  %v242_v14 = vand.u32 4294901760, %v137_v61  ;;  %v4061_v18 = vpack.c.bf16 %v1661_v38, %v1657_v49  ;;  %v139_v49 = vld [vmem:[#allocation7 + $0x168] sm:$0xff]  ;;  %v141_v51 = vld [vmem:[#allocation7 + $0x178] sm:$0xff] }
  0x6f   :  { %5920 = vst [vmem:[#allocation111_spill] sm:$0xff] %v4039_v36  ;;  %5921 = vst [vmem:[#allocation112_spill] sm:$0xff] %v4041_v28  ;;  %v4063_v0 = vsub.f32 %v1561_v26, %v1661_v38  ;;  %v4065_v10 = vpack.c.bf16 %v236_v35, %v232_v48  ;;  %v4067_v47 = vsub.f32 %v130_v30, %v232_v48  ;;  %v1564_v36 = vld [vmem:[#allocation7 + $0x2d0] sm:$0xff] }
  0x70   :  { %5922 = vst [vmem:[#allocation113_spill] sm:$0xff] %v4043_v9  ;;  %5923 = vst [vmem:[#allocation114_spill] sm:$0xff] %v4045_v5  ;;  %v1565_v5 = vld [vmem:[#allocation7 + $0x2d8] sm:$0xff]  ;;  %v134_v9 = vld [vmem:[#allocation7 + $0x140] sm:$0xff]  ;;  %v4069_v28 = vsub.f32 %v132_v33, %v236_v35  ;;  %v4071_v58 = vpack.c.bf16 %v1663_v53, %v1659_v32  ;;  %3265 = vmatprep.subr.bf16.mxu1 %v4061_v18  ;;  %v4079_v26 = vpack.c.bf16 %v242_v14, %v238_v60 }
  0x71   :  { %5924 = vst [vmem:[#allocation115_spill] sm:$0xff] %v4047_v7  ;;  %5925 = vst [vmem:[#allocation116_spill] sm:$0xff] %v4051_v6  ;;  %v1563_v7 = vld [vmem:[#allocation7 + $0x2c8] sm:$0xff]  ;;  %v4073_v6 = vsub.f32 %v1558_v42, %v1659_v32  ;;  %2979 = vmatpush1.bf16.msra.mxu0 %v4065_v10  ;;  %v4081_v30 = vsub.f32 %v135_v15, %v238_v60  ;;  %v4083_v38 = vsub.f32 %v137_v61, %v242_v14 }
  0x72   :  { %5926 = vst [vmem:[#allocation117_spill] sm:$0xff] %v4053_v19  ;;  %5927 = vst [vmem:[#allocation118_spill] sm:$0xff] %v4055_v4  ;;  %v136_v4 = vld [vmem:[#allocation7 + $0x150] sm:$0xff]  ;;  %v1562_v19 = vld [vmem:[#allocation7 + $0x2c0] sm:$0xff]  ;;  %v1665_v33 = vand.u32 4294901760, %v1563_v7  ;;  %3267 = vmatpush1.bf16.msra.mxu1 %v4071_v58  ;;  %v1669_v42 = vand.u32 4294901760, %v1565_v5  ;;  %2981 = vmatprep.subr.bf16.mxu0 %v4079_v26 }
  0x73   :  { %5928 = vst [vmem:[#allocation119_spill] sm:$0xff] %v4059_v16  ;;  %5929 = vst [vmem:[#allocation120_spill] sm:$0xff] %v4061_v18  ;;  %v4075_v16 = vsub.f32 %v1560_v46, %v1663_v53  ;;  %v240_v48 = vand.u32 4294901760, %v134_v9  ;;  %v244_v46 = vand.u32 4294901760, %v136_v4  ;;  %v1667_v35 = vand.u32 4294901760, %v1562_v19 }
  0x74   :  { %5930 = vst [vmem:[#allocation121_spill] sm:$0xff] %v4065_v10  ;;  %5931 = vst [vmem:[#allocation122_spill] sm:$0xff] %v4067_v47  ;;  %v4087_v32 = vsub.f32 %v1563_v7, %v1665_v33  ;;  %v1671_v53 = vand.u32 4294901760, %v1564_v36  ;;  %v246_v18 = vand.u32 4294901760, %v139_v49  ;;  %v250_v10 = vand.u32 4294901760, %v141_v51  ;;  %v1568_v47 = vld [vmem:[#allocation7 + $0x2f0] sm:$0xff] }
  0x75   :  { %5932 = vst [vmem:[#allocation123_spill] sm:$0xff] %v4069_v28  ;;  %5933 = vst [vmem:[#allocation124_spill] sm:$0xff] %v4071_v58  ;;  %v4089_v60 = vpack.c.bf16 %v1669_v42, %v1665_v33  ;;  %v4091_v61 = vsub.f32 %v1565_v5, %v1669_v42  ;;  %v4093_v14 = vpack.c.bf16 %v244_v46, %v240_v48  ;;  %v138_v58 = vld [vmem:[#allocation7 + $0x160] sm:$0xff]  ;;  %v66_v33 = vld [vmem:[#allocation2] sm:$0x3] }
  0x76   :  { %5934 = vst [vmem:[#allocation125_spill] sm:$0xff] %v4073_v6  ;;  %5935 = vst [vmem:[#allocation126_spill] sm:$0xff] %v4075_v16  ;;  %v1567_v16 = vld [vmem:[#allocation7 + $0x2e8] sm:$0xff]  ;;  %v1569_v6 = vld [vmem:[#allocation7 + $0x2f8] sm:$0xff]  ;;  %v4095_v15 = vsub.f32 %v134_v9, %v240_v48  ;;  %v4097_v28 = vsub.f32 %v136_v4, %v244_v46  ;;  %v4099_v7 = vpack.c.bf16 %v1671_v53, %v1667_v35 }
  0x77   :  { %5936 = vst [vmem:[#allocation127_spill] sm:$0xff] %v4079_v26  ;;  %5937 = vst [vmem:[#allocation128_spill] sm:$0xff] %v4081_v30  ;;  %v1566_v30 = vld [vmem:[#allocation7 + $0x2e0] sm:$0xff]  ;;  %v4101_v26 = vsub.f32 %v1562_v19, %v1667_v35  ;;  %3269 = vmatprep.subr.bf16.mxu1 %v4089_v60  ;;  %2983 = vmatpush1.bf16.msra.mxu0 %v4093_v14  ;;  %v4107_v5 = vpack.c.bf16 %v250_v10, %v246_v18  ;;  %v1673_v4 = vand.u32 4294901760, %v1567_v16 }
  0x78   :  { %5938 = vst [vmem:[#allocation129_spill] sm:$0xff] %v4083_v38  ;;  %5939 = vst [vmem:[#allocation130_spill] sm:$0xff] %v4087_v32  ;;  %v140_v38 = vld [vmem:[#allocation7 + $0x170] sm:$0xff]  ;;  %v4103_v32 = vsub.f32 %v1564_v36, %v1671_v53  ;;  %v4109_v9 = vsub.f32 %v139_v49, %v246_v18  ;;  %v4111_v42 = vsub.f32 %v141_v51, %v250_v10  ;;  %3271 = vmatpush1.bf16.msra.mxu1 %v4099_v7 }
  0x79   :  { %5940 = vst [vmem:[#allocation131_spill] sm:$0xff] %v4089_v60  ;;  %5941 = vst [vmem:[#allocation132_spill] sm:$0xff] %v4091_v61  ;;  %v1677_v48 = vand.u32 4294901760, %v1569_v6  ;;  %v248_v19 = vand.u32 4294901760, %v138_v58  ;;  %v252_v46 = vand.u32 4294901760, %v140_v38  ;;  %v1675_v36 = vand.u32 4294901760, %v1566_v30  ;;  %2985 = vmatprep.subr.bf16.mxu0 %v4107_v5 }
  0x7a   :  { %5942 = vst [vmem:[#allocation133_spill] sm:$0xff] %v4093_v14  ;;  %5943 = vst [vmem:[#allocation134_spill] sm:$0xff] %v4097_v28  ;;  %v4115_v35 = vsub.f32 %v1567_v16, %v1673_v4  ;;  %v1679_v53 = vand.u32 4294901760, %v1568_v47  ;;  %v2938_v60 = vmul.f32 -1.442695, %v66_v33  ;;  %v5541_v14 = vand.u32 4294901760, %v3802_v20 }
  0x7b   :  { %5944 = vst [vmem:[#allocation135_spill] sm:$0xff] %v4099_v7  ;;  %5945 = vst [vmem:[#allocation136_spill] sm:$0xff] %v4103_v32  ;;  %v1493_v32 = vld [vmem:[#allocation2 + $0x2] sm:$0x3]  ;;  %v4118_v18 = vpack.c.bf16 %v1677_v48, %v1673_v4  ;;  %v4120_v51 = vsub.f32 %v1569_v6, %v1677_v48  ;;  %v4122_v10 = vpack.c.bf16 %v252_v46, %v248_v19  ;;  %v5552_v4 = vand.u32 4294901760, %v3817_v31 }
  0x7c   :  { %5946 = vst [vmem:[#allocation137_spill] sm:$0xff] %v4107_v5  ;;  %5947 = vst [vmem:[#allocation138_spill] sm:$0xff] %v4111_v42  ;;  %v4124_v49 = vsub.f32 %v138_v58, %v248_v19  ;;  %v4126_v7 = vsub.f32 %v140_v38, %v252_v46  ;;  %v4128_v42 = vpack.c.bf16 %v1679_v53, %v1675_v36  ;;  %3624 = vpow2.f32 %v2938_v60 }
  0x7d   :  { %5948 = vst [vmem:[#allocation139_spill] sm:$0xff] %v4118_v18  ;;  %5949 = vst [vmem:[#allocation140_spill] sm:$0xff] %v4122_v10  ;;  %v4130_v5 = vsub.f32 %v1566_v30, %v1675_v36  ;;  %v4132_v16 = vsub.f32 %v1568_v47, %v1679_v53  ;;  %3273 = vmatprep.subr.bf16.mxu1 %v4118_v18  ;;  %2987 = vmatpush1.bf16.msra.mxu0 %v4122_v10  ;;  %v5539_v58 = vand.u32 4294901760, %v3804_v21 }
  0x7e   :  { %5950 = vst [vmem:[#allocation141_spill] sm:$0xff] %v4128_v42  ;;  %v354_v6 = vsub.f32 %v3802_v20, %v5541_v14  ;;  %v2939_v33 = vmul.f32 -1.442695, %v1493_v32  ;;  %3275 = vmatpush1.bf16.msra.mxu1 %v4128_v42  ;;  %v5540_v38 = vand.u32 4294901760, %v3806_v22  ;;  %v5544_v30 = vand.u32 4294901760, %v3810_v27 }
  0x7f   :  { %v5551_v47 = vand.u32 4294901760, %v3814_v29  ;;  %v366_v60 = vsub.f32 %v3804_v21, %v5539_v58  ;;  %v5553_v19 = vand.u32 4294901760, %v3823_v43  ;;  %v372_v53 = vsub.f32 %v3817_v31, %v5552_v4 }
  0x80   :  { %v355_v48 = vand.u32 4294901760, %v354_v6  ;;  %3626 = vpow2.f32 %v2939_v33  ;;  %v1781_v32 = vsub.f32 %v3806_v22, %v5540_v38  ;;  %v1793_v46 = vsub.f32 %v3810_v27, %v5544_v30 }
  0x81   :  { %v360_v36 = vsub.f32 %v3814_v29, %v5551_v47  ;;  %v367_v6 = vand.u32 4294901760, %v366_v60  ;;  %v1787_v33 = vsub.f32 %v3823_v43, %v5553_v19  ;;  %v5556_v58 = vand.u32 4294901760, %v3825_v44 }
  0x82   :  { %v5559_v38 = vand.u32 4294901760, %v3827_v45  ;;  %v1782_v14 = vand.u32 4294901760, %v1781_v32  ;;  %v1794_v42 = vand.u32 4294901760, %v1793_v46  ;;  %v373_v10 = vand.u32 4294901760, %v372_v53 }
  0x83   :  { %v361_v30 = vand.u32 4294901760, %v360_v36  ;;  %v2988_v18 = vpack.c.bf16 %v367_v6, %v355_v48  ;;  %v1788_v27 = vand.u32 4294901760, %v1787_v33  ;;  %v1799_v47 = vsub.f32 %v3825_v44, %v5556_v58 }
  0x84   :  { %v378_v60 = vsub.f32 %v3827_v45, %v5559_v38  ;;  %v3276_v4 = vpack.c.bf16 %v1794_v42, %v1782_v14  ;;  %v5558_v43 = vand.u32 4294901760, %v3831_v50  ;;  %v5557_v32 = vand.u32 4294901760, %v3835_v52 }
  0x85   :  { %v4172_v19 = vpack.c.bf16 %v373_v10, %v361_v30  ;;  %2989 = vmatprep.subr.bf16.mxu0 %v2988_v18  ;;  %v1800_v46 = vand.u32 4294901760, %v1799_v47  ;;  %v5560_v48 = vand.u32 4294901760, %v3838_v54  ;;  %v5561_v53 = vand.u32 4294901760, %v3840_v56 }
  0x86   :  { %v379_v36 = vand.u32 4294901760, %v378_v60  ;;  %3277 = vmatprep.subr.bf16.mxu1 %v3276_v4  ;;  %v390_v6 = vsub.f32 %v3831_v50, %v5558_v43  ;;  %v1805_v14 = vsub.f32 %v3835_v52, %v5557_v32  ;;  %v5566_v42 = vand.u32 4294901760, %v3846_v2  ;;  %v3625_v18 = vpop.eup %3624 }
  0x87   :  { %v5567_v10 = vand.u32 4294901760, %v3848_v3  ;;  %v4186_v30 = vpack.c.bf16 %v1800_v46, %v1788_v27  ;;  %v1817_v47 = vsub.f32 %v3838_v54, %v5560_v48  ;;  %v384_v4 = vsub.f32 %v3840_v56, %v5561_v53 }
  0x88   :  { %v5573_v33 = vand.u32 4294901760, %v3852_v11  ;;  %v70_v60 = vadd.f32 1.0, %v3625_v18  ;;  %v391_v58 = vand.u32 4294901760, %v390_v6  ;;  %v1806_v32 = vand.u32 4294901760, %v1805_v14 }
  0x89   :  { %v396_v43 = vsub.f32 %v3846_v2, %v5566_v42  ;;  %v1818_v27 = vand.u32 4294901760, %v1817_v47  ;;  %v385_v46 = vand.u32 4294901760, %v384_v4  ;;  %v1811_v48 = vsub.f32 %v3848_v3, %v5567_v10 }
  0x8a   :  { %v3627_v38 = vpop.eup %3626  ;;  %v1823_v53 = vsub.f32 %v3852_v11, %v5573_v33  ;;  %3628 = vrcp.f32 %v70_v60  ;;  %v4204_v18 = vpack.c.bf16 %v391_v58, %v379_v36  ;;  %v5577_v47 = vand.u32 4294901760, %v3856_v13  ;;  %v5968_v11 = vld [vmem:[#allocation63_spill] sm:$0xff] }
  0x8b   :  { %v1497_v56 = vadd.f32 1.0, %v3627_v38  ;;  %v397_v6 = vand.u32 4294901760, %v396_v43  ;;  %v4206_v14 = vpack.c.bf16 %v1818_v27, %v1806_v32  ;;  %v1812_v54 = vand.u32 4294901760, %v1811_v48 }
  0x8c   :  { %v1824_v42 = vand.u32 4294901760, %v1823_v53  ;;  %v5576_v10 = vand.u32 4294901760, %v3859_v17  ;;  %v5572_v3 = vand.u32 4294901760, %v3863_v23  ;;  %v402_v58 = vsub.f32 %v3856_v13, %v5577_v47 }
  0x8d   :  { %3630 = vrcp.f32 %v1497_v56  ;;  %v4209_v4 = vpack.c.bf16 %v397_v6, %v385_v46  ;;  %v5574_v43 = vand.u32 4294901760, %v3865_v24  ;;  %v5575_v38 = vand.u32 4294901760, %v3872_v40 }
  0x8e   :  { %v4213_v2 = vpack.c.bf16 %v1824_v42, %v1812_v54  ;;  %v414_v56 = vsub.f32 %v3859_v17, %v5576_v10  ;;  %v1829_v32 = vsub.f32 %v3863_v23, %v5572_v3  ;;  %v5580_v54 = vand.u32 4294901760, %v3874_v41 }
  0x8f   :  { %v5581_v36 = vand.u32 4294901760, %v3878_v55  ;;  %v403_v48 = vand.u32 4294901760, %v402_v58  ;;  %v1841_v53 = vsub.f32 %v3865_v24, %v5574_v43  ;;  %v408_v42 = vsub.f32 %v3872_v40, %v5575_v38 }
  0x90   :  { %v5584_v60 = vand.u32 4294901760, %v3880_v57  ;;  %v415_v27 = vand.u32 4294901760, %v414_v56  ;;  %v1830_v46 = vand.u32 4294901760, %v1829_v32  ;;  %v420_v6 = vsub.f32 %v3874_v41, %v5580_v54 }
  0x91   :  { %v1835_v58 = vsub.f32 %v3878_v55, %v5581_v36  ;;  %v1842_v3 = vand.u32 4294901760, %v1841_v53  ;;  %v409_v33 = vand.u32 4294901760, %v408_v42  ;;  %v5587_v38 = vand.u32 4294901760, %v3884_v59  ;;  %v57_v55 = vld [vmem:[#allocation5 + $0x8] sm:$0xff] }
  0x92   :  { %v1847_v43 = vsub.f32 %v3880_v57, %v5584_v60  ;;  %v4245_v10 = vpack.c.bf16 %v415_v27, %v403_v48  ;;  %v421_v56 = vand.u32 4294901760, %v420_v6  ;;  %v5590_v47 = vand.u32 4294901760, %v3888_v62  ;;  %v56_v60 = vld [vmem:[#allocation5] sm:$0xff] }
  0x93   :  { %v1836_v32 = vand.u32 4294901760, %v1835_v58  ;;  %v4248_v40 = vpack.c.bf16 %v1842_v3, %v1830_v46  ;;  %v426_v53 = vsub.f32 %v3884_v59, %v5587_v38  ;;  %v5595_v27 = vand.u32 4294901760, %v3895_v8 }
  0x94   :  { %v1848_v54 = vand.u32 4294901760, %v1847_v43  ;;  %v3629_v36 = vpop.eup %3628  ;;  %v4254_v57 = vpack.c.bf16 %v421_v56, %v409_v33  ;;  %v438_v48 = vsub.f32 %v3888_v62, %v5590_v47  ;;  %v5951_v43 = vsub.s32 1, %v3796_v1 }
  0x95   :  { %v5952_v6 = vsub.s32 0, %v3796_v1  ;;  %v427_v33 = vand.u32 4294901760, %v426_v53  ;;  %v5953_v59 = vand.u32 4294901760, %v3892_v25  ;;  %v1865_v3 = vsub.f32 %v3895_v8, %v5595_v27 }
  0x96   :  { %v4263_v46 = vrot.slane %v3629_v36, %v5951_v43  ;;  %v4269_v38 = vpack.c.bf16 %v1848_v54, %v1836_v32  ;;  %v439_v42 = vand.u32 4294901760, %v438_v48  ;;  %v5954_v43 = vand.u32 4294901760, %v3898_v34 }
  0x97   :  { %v4267_v58 = vrot.slane %v3629_v36, %v5952_v6  ;;  %v3631_v56 = vpop.eup %3630  ;;  %v1853_v47 = vsub.f32 %v3892_v25, %v5953_v59  ;;  %v5955_v54 = vsub.s32 1, %v3796_v1  ;;  %v5956_v48 = vmov %v5952_v6 }
  0x98   :  { %v432_v62 = vsub.f32 %v3898_v34, %v5954_v43  ;;  %v85_v36 = vmul.f32 %v4263_v46, %v57_v55  ;;  %v4288_v6 = vrot.slane %v3631_v56, %v5956_v48  ;;  %v4290_v59 = vpack.c.bf16 %v439_v42, %v427_v33 }
  0x99   :  { %v4283_v32 = vrot.slane %v3631_v56, %v5955_v54  ;;  %v84_v53 = vmul.f32 %v4267_v58, %v56_v60  ;;  %v1854_v25 = vand.u32 4294901760, %v1853_v47  ;;  %v1866_v27 = vand.u32 4294901760, %v1865_v3 }
  0x9a   :  { %v433_v8 = vand.u32 4294901760, %v432_v62  ;;  %v144_v41 = vsel %vm142_vm0, %v85_v36, 0  ;;  %v1511_v54 = vmul.f32 %v4288_v6, %v56_v60  ;;  %v5606_v1 = vand.u32 4294901760, %v3902_v39 }
  0x9b   :  { %v1512_v43 = vmul.f32 %v4283_v32, %v57_v55  ;;  %v4294_v34 = vand.u32 4294901760, %v84_v53  ;;  %v4297_v24 = vand.u32 4294901760, %v144_v41  ;;  %v4299_v23 = vpack.c.bf16 %v1866_v27, %v1854_v25 }
  0x9c   :  { %v5609_v42 = vand.u32 4294901760, %v3906_v37  ;;  %v4307_v3 = vand.u32 4294901760, %v1511_v54  ;;  %v5612_v55 = vand.u32 4294901760, %v3908_v63  ;;  %v444_v25 = vsub.f32 %v3902_v39, %v5606_v1 }
  0x9d   :  { %5957 = vst [vmem:[#allocation142_spill] sm:$0xff] %v4294_v34  ;;  %5958 = vst [vmem:[#allocation143_spill] sm:$0xff] %v4297_v24  ;;  %v1571_v47 = vsel %vm142_vm0, %v1512_v43, 0  ;;  %v4305_v62 = vsub.f32 %v84_v53, %v4294_v34  ;;  %v4311_v33 = vsub.f32 %v144_v41, %v4297_v24  ;;  %v5624_v53 = vand.u32 4294901760, %v3912_v12 }
  0x9e   :  { %5960 = vst [vmem:[#allocation145_spill] sm:$0xff] %v4307_v3  ;;  %v4313_v60 = vand.u32 4294901760, %v1571_v47  ;;  %v1859_v27 = vsub.f32 %v3906_v37, %v5609_v42  ;;  %v4323_v36 = vsub.f32 %v1511_v54, %v4307_v3  ;;  %v1871_v41 = vsub.f32 %v3908_v63, %v5612_v55 }
  0x9f   :  { %5959 = vst [vmem:[#allocation144_spill] sm:$0xff] %v4305_v62  ;;  %5961 = vst [vmem:[#allocation146_spill] sm:$0xff] %v4311_v33  ;;  %v5619_v56 = vand.u32 4294901760, %v4305_v62  ;;  %v5625_v48 = vand.u32 4294901760, %v4311_v33  ;;  %v445_v1 = vand.u32 4294901760, %v444_v25  ;;  %v450_v55 = vsub.f32 %v3912_v12, %v5624_v53  ;;  %v5965_v25 = vld [vmem:[#allocation58_spill] sm:$0xff] }
  0xa0   :  { %5962 = vst [vmem:[#allocation147_spill] sm:$0xff] %v4313_v60  ;;  %5963 = vst [vmem:[#allocation148_spill] sm:$0xff] %v4323_v36  ;;  %v4331_v43 = vsub.f32 %v1571_v47, %v4313_v60  ;;  %v1860_v39 = vand.u32 4294901760, %v1859_v27  ;;  %v5634_v54 = vand.u32 4294901760, %v4323_v36  ;;  %v1872_v37 = vand.u32 4294901760, %v1871_v41 }
  0xa1   :  { %v279_v42 = vsub.f32 %v4305_v62, %v5619_v56  ;;  %v273_v63 = vsub.f32 %v4311_v33, %v5625_v48  ;;  %v4344_v3 = vpack.c.bf16 %v445_v1, %v433_v8  ;;  %v5638_v27 = vand.u32 4294901760, %v5965_v25  ;;  %v5966_v1 = vld [vmem:[#allocation59_spill] sm:$0xff] }
  0xa2   :  { %5964 = vst [vmem:[#allocation149_spill] sm:$0xff] %v4331_v43  ;;  %v5635_v47 = vand.u32 4294901760, %v4331_v43  ;;  %v1706_v56 = vsub.f32 %v4323_v36, %v5634_v54  ;;  %v4350_v41 = vpack.c.bf16 %v1872_v37, %v1860_v39  ;;  %v451_v62 = vand.u32 4294901760, %v450_v55  ;;  %v5969_v54 = vld [vmem:[#allocation64_spill] sm:$0xff] }
  0xa3   :  { %v280_v17 = vand.u32 4294901760, %v279_v42  ;;  %v274_v13 = vand.u32 4294901760, %v273_v63  ;;  %v462_v8 = vsub.f32 %v5965_v25, %v5638_v27  ;;  %v5639_v48 = vand.u32 4294901760, %v5966_v1  ;;  %v5967_v42 = vld [vmem:[#allocation61_spill] sm:$0xff] }
  0xa4   :  { %v1700_v53 = vsub.f32 %v4331_v43, %v5635_v47  ;;  %v1707_v33 = vand.u32 4294901760, %v1706_v56  ;;  %v5640_v12 = vand.u32 4294901760, %v5967_v42  ;;  %v5644_v52 = vand.u32 4294901760, %v5968_v11  ;;  %v5970_v47 = vld [vmem:[#allocation66_spill] sm:$0xff]  ;;  %v5972_v43 = vld [vmem:[#allocation69_spill] sm:$0xff] }
  0xa5   :  { %v5646_v39 = vand.u32 4294901760, %v5969_v54  ;;  %275 = vmatprep.mubr.f32.mxu0 %v274_v13  ;;  %v463_v63 = vand.u32 4294901760, %v462_v8  ;;  %v1877_v55 = vsub.f32 %v5966_v1, %v5639_v48  ;;  %v5647_v36 = vand.u32 4294901760, %v5970_v47 }
  0xa6   :  { %v1701_v37 = vand.u32 4294901760, %v1700_v53  ;;  %281 = vmatmul.mubr.f32.vlgmr.msra.gmra.mrb[0].mxu0 %v280_v17  ;;  %v1889_v56 = vsub.f32 %v5967_v42, %v5640_v12  ;;  %v456_v27 = vsub.f32 %v5968_v11, %v5644_v52  ;;  %v5971_v53 = vld [vmem:[#allocation67_spill] sm:$0xff]  ;;  %v5650_v42 = vand.u32 4294901760, %v5972_v43 }
  0xa7   :  { %v468_v13 = vsub.f32 %v5969_v54, %v5646_v39  ;;  %v5649_v8 = vand.u32 4294901760, %v5971_v53  ;;  %2991 = vmatpush1.bf16.msra.mxu0 %v4172_v19  ;;  %v4377_v48 = vpack.c.bf16 %v463_v63, %v451_v62  ;;  %v1878_v17 = vand.u32 4294901760, %v1877_v55  ;;  %v5973_v63 = vld [vmem:[#allocation70_spill] sm:$0xff]  ;;  %v6022_v54 = vld [vmem:[#allocation123_spill] sm:$0xff] }
  0xa8   :  { %1702 = vmatprep.mubr.f32.mxu1 %v1701_v37  ;;  %v1883_v12 = vsub.f32 %v5970_v47, %v5647_v36  ;;  %2993 = vmatprep.subr.bf16.mxu0 %v4204_v18  ;;  %v1890_v52 = vand.u32 4294901760, %v1889_v56  ;;  %v457_v11 = vand.u32 4294901760, %v456_v27  ;;  %v474_v62 = vsub.f32 %v5972_v43, %v5650_v42  ;;  %v5974_v36 = vld [vmem:[#allocation71_spill] sm:$0xff] }
  0xa9   :  { %1708 = vmatmul.mubr.f32.vlgmr.msra.gmra.mrb[0].mxu1 %v1707_v33  ;;  %v469_v39 = vand.u32 4294901760, %v468_v13  ;;  %v1895_v37 = vsub.f32 %v5971_v53, %v5649_v8  ;;  %v5653_v55 = vand.u32 4294901760, %v5973_v63  ;;  %v5652_v33 = vand.u32 4294901760, %v5974_v36  ;;  %v5975_v13 = vld [vmem:[#allocation73_spill] sm:$0xff]  ;;  %v5976_v42 = vld [vmem:[#allocation75_spill] sm:$0xff] }
  0xaa   :  { %3279 = vmatpush1.bf16.msra.mxu1 %v4186_v30  ;;  %v1884_v19 = vand.u32 4294901760, %v1883_v12  ;;  %v3292_v18 = vpack.c.bf16 %v1890_v52, %v1878_v17  ;;  %v5654_v47 = vand.u32 4294901760, %v5975_v13  ;;  %v475_v30 = vand.u32 4294901760, %v474_v62 }
  0xab   :  { %3281 = vmatprep.subr.bf16.mxu1 %v4206_v14  ;;  %v4394_v27 = vpack.c.bf16 %v469_v39, %v457_v11  ;;  %v1896_v56 = vand.u32 4294901760, %v1895_v37  ;;  %2995 = vmatpush1.bf16.msra.mxu0 %v4209_v4  ;;  %v486_v12 = vsub.f32 %v5973_v63, %v5653_v55  ;;  %v1901_v8 = vsub.f32 %v5974_v36, %v5652_v33  ;;  %v5977_v14 = vld [vmem:[#allocation76_spill] sm:$0xff]  ;;  %v5978_v39 = vld [vmem:[#allocation78_spill] sm:$0xff]  ;;  %v5979_v55 = vld [vmem:[#allocation79_spill] sm:$0xff] }
  0xac   :  { %v5656_v53 = vand.u32 4294901760, %v5976_v42  ;;  %2997 = vmatprep.subr.bf16.mxu0 %v4245_v10  ;;  %v1913_v11 = vsub.f32 %v5975_v13, %v5654_v47  ;;  %v5658_v4 = vand.u32 4294901760, %v5977_v14  ;;  %v5660_v17 = vand.u32 4294901760, %v5978_v39  ;;  %v6015_v36 = vld [vmem:[#allocation118_spill] sm:$0xff] }
  0xad   :  { %v4406_v52 = vpack.c.bf16 %v1896_v56, %v1884_v19  ;;  %v487_v37 = vand.u32 4294901760, %v486_v12  ;;  %v1902_v62 = vand.u32 4294901760, %v1901_v8  ;;  %v5661_v10 = vand.u32 4294901760, %v5979_v55 }
  0xae   :  { %3283 = vmatpush1.bf16.msra.mxu1 %v4213_v2  ;;  %v480_v33 = vsub.f32 %v5976_v42, %v5656_v53  ;;  %v1914_v19 = vand.u32 4294901760, %v1913_v11  ;;  %v492_v56 = vsub.f32 %v5977_v14, %v5658_v4  ;;  %v1907_v47 = vsub.f32 %v5978_v39, %v5660_v17  ;;  %v5980_v2 = vld [vmem:[#allocation81_spill] sm:$0xff] }
  0xaf   :  { %3285 = vmatprep.subr.bf16.mxu1 %v4248_v40  ;;  %v5665_v12 = vand.u32 4294901760, %v5980_v2  ;;  %2999 = vmatpush1.bf16.msra.mxu0 %v4254_v57  ;;  %v3008_v8 = vpack.c.bf16 %v487_v37, %v475_v30  ;;  %v1919_v53 = vsub.f32 %v5979_v55, %v5661_v10  ;;  %v5981_v40 = vld [vmem:[#allocation82_spill] sm:$0xff]  ;;  %v5982_v30 = vld [vmem:[#allocation83_spill] sm:$0xff]  ;;  %v5983_v10 = vld [vmem:[#allocation85_spill] sm:$0xff]  ;;  %v5735_v1 = vand.u32 4294901760, %v6022_v54 }
  0xb0   :  { %v481_v13 = vand.u32 4294901760, %v480_v33  ;;  %v5664_v11 = vand.u32 4294901760, %v5981_v40  ;;  %3001 = vmatprep.subr.bf16.mxu0 %v4290_v59  ;;  %v3296_v42 = vpack.c.bf16 %v1914_v19, %v1902_v62  ;;  %v493_v4 = vand.u32 4294901760, %v492_v56  ;;  %v5985_v56 = vld [vmem:[#allocation88_spill] sm:$0xff] }
  0xb1   :  { %v1908_v14 = vand.u32 4294901760, %v1907_v47  ;;  %v498_v17 = vsub.f32 %v5980_v2, %v5665_v12  ;;  %v1920_v57 = vand.u32 4294901760, %v1919_v53  ;;  %v5666_v37 = vand.u32 4294901760, %v5982_v30  ;;  %v5984_v47 = vld [vmem:[#allocation87_spill] sm:$0xff] }
  0xb2   :  { %3287 = vmatpush1.bf16.msra.mxu1 %v4269_v38  ;;  %v510_v33 = vsub.f32 %v5981_v40, %v5664_v11  ;;  %v5667_v55 = vand.u32 4294901760, %v5983_v10  ;;  %v3010_v59 = vpack.c.bf16 %v493_v4, %v481_v13  ;;  %v5670_v19 = vand.u32 4294901760, %v5984_v47  ;;  %v5986_v13 = vld [vmem:[#allocation90_spill] sm:$0xff]  ;;  %v5987_v4 = vld [vmem:[#allocation91_spill] sm:$0xff] }
  0xb3   :  { %3289 = vmatprep.subr.bf16.mxu1 %v4299_v23  ;;  %v499_v62 = vand.u32 4294901760, %v498_v17  ;;  %v5671_v39 = vand.u32 4294901760, %v5985_v56  ;;  %3003 = vmatpush1.bf16.msra.mxu0 %v4344_v3  ;;  %v3298_v38 = vpack.c.bf16 %v1920_v57, %v1908_v14  ;;  %v1925_v11 = vsub.f32 %v5982_v30, %v5666_v37 }
  0xb4   :  { %v511_v53 = vand.u32 4294901760, %v510_v33  ;;  %v1937_v12 = vsub.f32 %v5983_v10, %v5667_v55  ;;  %3005 = vmatprep.subr.bf16.mxu0 %v4377_v48  ;;  %v504_v23 = vsub.f32 %v5984_v47, %v5670_v19  ;;  %v5673_v14 = vand.u32 4294901760, %v5986_v13  ;;  %v5988_v55 = vld [vmem:[#allocation93_spill] sm:$0xff] }
  0xb5   :  { %v516_v3 = vsub.f32 %v5985_v56, %v5671_v39  ;;  %v5675_v17 = vand.u32 4294901760, %v5987_v4  ;;  %v1926_v33 = vand.u32 4294901760, %v1925_v11  ;;  %v5676_v10 = vand.u32 4294901760, %v5988_v55 }
  0xb6   :  { %3291 = vmatpush1.bf16.msra.mxu1 %v4350_v41  ;;  %v3012_v57 = vpack.c.bf16 %v511_v53, %v499_v62  ;;  %v1938_v37 = vand.u32 4294901760, %v1937_v12  ;;  %v505_v48 = vand.u32 4294901760, %v504_v23  ;;  %v1931_v19 = vsub.f32 %v5986_v13, %v5673_v14  ;;  %v5989_v12 = vld [vmem:[#allocation94_spill] sm:$0xff]  ;;  %v5991_v14 = vld [vmem:[#allocation97_spill] sm:$0xff] }
  0xb7   :  { %3293 = vmatprep.subr.bf16.mxu1 %v3292_v18  ;;  %v517_v30 = vand.u32 4294901760, %v516_v3  ;;  %v1943_v39 = vsub.f32 %v5987_v4, %v5675_v17  ;;  %3007 = vmatpush1.bf16.msra.mxu0 %v4394_v27  ;;  %v522_v41 = vsub.f32 %v5988_v55, %v5676_v10  ;;  %v5678_v11 = vand.u32 4294901760, %v5989_v12  ;;  %v5990_v18 = vld [vmem:[#allocation95_spill] sm:$0xff]  ;;  %v59_v4 = vld [vmem:[#allocation5 + $0x18] sm:$0xff] }
  0xb8   :  { %v3300_v56 = vpack.c.bf16 %v1938_v37, %v1926_v33  ;;  %v5679_v62 = vand.u32 4294901760, %v5990_v18  ;;  %3009 = vmatprep.subr.bf16.mxu0 %v3008_v8  ;;  %v1932_v23 = vand.u32 4294901760, %v1931_v19  ;;  %v5683_v13 = vand.u32 4294901760, %v5991_v14  ;;  %v5992_v33 = vld [vmem:[#allocation99_spill] sm:$0xff]  ;;  %v5994_v19 = vld [vmem:[#allocation102_spill] sm:$0xff] }
  0xb9   :  { %v3014_v53 = vpack.c.bf16 %v517_v30, %v505_v48  ;;  %v1944_v3 = vand.u32 4294901760, %v1943_v39  ;;  %v523_v17 = vand.u32 4294901760, %v522_v41  ;;  %v534_v27 = vsub.f32 %v5989_v12, %v5678_v11  ;;  %v5993_v30 = vld [vmem:[#allocation100_spill] sm:$0xff] }
  0xba   :  { %3295 = vmatpush1.bf16.msra.mxu1 %v4406_v52  ;;  %v1949_v37 = vsub.f32 %v5990_v18, %v5679_v62  ;;  %v5682_v10 = vand.u32 4294901760, %v5992_v33  ;;  %v1961_v39 = vsub.f32 %v5991_v14, %v5683_v13  ;;  %v5686_v52 = vand.u32 4294901760, %v5993_v30  ;;  %v5995_v18 = vld [vmem:[#allocation103_spill] sm:$0xff]  ;;  %v5996_v13 = vld [vmem:[#allocation105_spill] sm:$0xff] }
  0xbb   :  { %3297 = vmatprep.subr.bf16.mxu1 %v3296_v42  ;;  %v3302_v8 = vpack.c.bf16 %v1944_v3, %v1932_v23  ;;  %v5688_v48 = vand.u32 4294901760, %v5994_v19  ;;  %3011 = vmatpush1.bf16.msra.mxu0 %v3010_v59  ;;  %v535_v41 = vand.u32 4294901760, %v534_v27  ;;  %v5689_v12 = vand.u32 4294901760, %v5995_v18 }
  0xbc   :  { %v1950_v11 = vand.u32 4294901760, %v1949_v37  ;;  %v528_v62 = vsub.f32 %v5992_v33, %v5682_v10  ;;  %3013 = vmatprep.subr.bf16.mxu0 %v3012_v57  ;;  %v1962_v42 = vand.u32 4294901760, %v1961_v39  ;;  %v540_v23 = vsub.f32 %v5993_v30, %v5686_v52 }
  0xbd   :  { %v1955_v3 = vsub.f32 %v5994_v19, %v5688_v48  ;;  %v87_v59 = vmul.f32 %v4263_v46, %v59_v4  ;;  %v3016_v27 = vpack.c.bf16 %v535_v41, %v523_v17  ;;  %v1967_v10 = vsub.f32 %v5995_v18, %v5689_v12  ;;  %v5998_v17 = vld [vmem:[#allocation106_spill] sm:$0xff]  ;;  %v58_v41 = vld [vmem:[#allocation5 + $0x10] sm:$0xff] }
  0xbe   :  { %3299 = vmatpush1.bf16.msra.mxu1 %v3298_v38  ;;  %v529_v37 = vand.u32 4294901760, %v528_v62  ;;  %v5690_v57 = vand.u32 4294901760, %v5996_v13  ;;  %v3304_v39 = vpack.c.bf16 %v1962_v42, %v1950_v11  ;;  %v541_v33 = vand.u32 4294901760, %v540_v23  ;;  %v5999_v11 = vld [vmem:[#allocation107_spill] sm:$0xff]  ;;  %v6000_v23 = vld [vmem:[#allocation109_spill] sm:$0xff]  ;;  %v6005_v18 = vld [vmem:[#allocation112_spill] sm:$0xff] }
  0xbf   :  { %3301 = vmatprep.subr.bf16.mxu1 %v3300_v56  ;;  %v1956_v14 = vand.u32 4294901760, %v1955_v3  ;;  %v147_v52 = vsel %vm142_vm0, %v87_v59, 0  ;;  %3015 = vmatpush1.bf16.msra.mxu0 %v3014_v53  ;;  %v1968_v30 = vand.u32 4294901760, %v1967_v10  ;;  %v5691_v62 = vand.u32 4294901760, %v5998_v17 }
  0xc0   :  { %v4504_v48 = vand.u32 4294901760, %v147_v52  ;;  %v546_v38 = vsub.f32 %v5996_v13, %v5690_v57  ;;  %3017 = vmatprep.subr.bf16.mxu0 %v3016_v27  ;;  %v3018_v12 = vpack.c.bf16 %v541_v33, %v529_v37  ;;  %v1514_v56 = vmul.f32 %v4283_v32, %v59_v4  ;;  %v6003_v37 = vld [vmem:[#allocation111_spill] sm:$0xff] }
  0xc1   :  { %v5693_v42 = vand.u32 4294901760, %v5999_v11  ;;  %v5694_v3 = vand.u32 4294901760, %v6000_v23  ;;  %v3306_v53 = vpack.c.bf16 %v1968_v30, %v1956_v14  ;;  %v558_v57 = vsub.f32 %v5998_v17, %v5691_v62  ;;  %v61_v13 = vld [vmem:[#allocation5 + $0x28] sm:$0xff] }
  0xc2   :  { %5997 = vst [vmem:[#allocation150_spill] sm:$0xff] %v4504_v48  ;;  %3303 = vmatpush1.bf16.msra.mxu1 %v3302_v8  ;;  %v4514_v10 = vsub.f32 %v147_v52, %v4504_v48  ;;  %v547_v59 = vand.u32 4294901760, %v546_v38  ;;  %v1574_v27 = vsel %vm142_vm0, %v1514_v56, 0  ;;  %v86_v14 = vmul.f32 %v4267_v58, %v58_v41 }
  0xc3   :  { %3305 = vmatprep.subr.bf16.mxu1 %v3304_v39  ;;  %v1973_v4 = vsub.f32 %v5999_v11, %v5693_v42  ;;  %v1985_v33 = vsub.f32 %v6000_v23, %v5694_v3  ;;  %3019 = vmatpush1.bf16.msra.mxu0 %v3018_v12  ;;  %v559_v30 = vand.u32 4294901760, %v558_v57  ;;  %v4528_v52 = vand.u32 4294901760, %v1574_v27 }
  0xc4   :  { %6001 = vst [vmem:[#allocation107_spill] sm:$0xff] %v4514_v10  ;;  %v5698_v8 = vand.u32 4294901760, %v4514_v10  ;;  %v5701_v39 = vand.u32 4294901760, %v6003_v37  ;;  %v4531_v62 = vand.u32 4294901760, %v86_v14  ;;  %v5703_v42 = vand.u32 4294901760, %v6005_v18 }
  0xc5   :  { %6002 = vst [vmem:[#allocation109_spill] sm:$0xff] %v4528_v52  ;;  %v1974_v38 = vand.u32 4294901760, %v1973_v4  ;;  %v1986_v56 = vand.u32 4294901760, %v1985_v33  ;;  %v3020_v19 = vpack.c.bf16 %v559_v30, %v547_v59  ;;  %v4538_v12 = vsub.f32 %v1574_v27, %v4528_v52  ;;  %v6008_v30 = vld [vmem:[#allocation114_spill] sm:$0xff] }
  0xc6   :  { %6004 = vst [vmem:[#allocation111_spill] sm:$0xff] %v4531_v62  ;;  %3307 = vmatpush1.bf16.msra.mxu1 %v3306_v53  ;;  %v289_v3 = vsub.f32 %v4514_v10, %v5698_v8  ;;  %v552_v57 = vsub.f32 %v6003_v37, %v5701_v39  ;;  %v4544_v4 = vsub.f32 %v86_v14, %v4531_v62  ;;  %v5708_v10 = vand.u32 4294901760, %v6008_v30  ;;  %v6010_v39 = vld [vmem:[#allocation115_spill] sm:$0xff] }
  0xc7   :  { %6006 = vst [vmem:[#allocation112_spill] sm:$0xff] %v4538_v12  ;;  %v3308_v17 = vpack.c.bf16 %v1986_v56, %v1974_v38  ;;  %v564_v53 = vsub.f32 %v6005_v18, %v5703_v42  ;;  %v1513_v33 = vmul.f32 %v4288_v6, %v58_v41  ;;  %3021 = vmatprep.subr.bf16.mxu0 %v3020_v19  ;;  %v5704_v59 = vand.u32 4294901760, %v4538_v12 }
  0xc8   :  { %6007 = vst [vmem:[#allocation151_spill] sm:$0xff] %v4544_v4  ;;  %v290_v8 = vand.u32 4294901760, %v289_v3  ;;  %v553_v27 = vand.u32 4294901760, %v552_v57  ;;  %v5711_v38 = vand.u32 4294901760, %v4544_v4  ;;  %v1979_v19 = vsub.f32 %v6008_v30, %v5708_v10  ;;  %v6011_v57 = vld [vmem:[#allocation117_spill] sm:$0xff] }
  0xc9   :  { %3309 = vmatprep.subr.bf16.mxu1 %v3308_v17  ;;  %v565_v56 = vand.u32 4294901760, %v564_v53  ;;  %v4553_v14 = vand.u32 4294901760, %v1513_v33  ;;  %v1716_v41 = vsub.f32 %v4538_v12, %v5704_v59  ;;  %v89_v3 = vmul.f32 %v4263_v46, %v61_v13 }
  0xca   :  { %291 = vmatprep.mubr.f32.mxu0 %v290_v8  ;;  %v5715_v17 = vand.u32 4294901760, %v6011_v57  ;;  %v295_v53 = vsub.f32 %v4544_v4, %v5711_v38  ;;  %v6013_v8 = vand.u32 4294901760, %v6010_v39  ;;  %v1980_v47 = vand.u32 4294901760, %v1979_v19  ;;  %v6016_v19 = vld [vmem:[#allocation119_spill] sm:$0xff] }
  0xcb   :  { %6009 = vst [vmem:[#allocation114_spill] sm:$0xff] %v4553_v14  ;;  %v3022_v42 = vpack.c.bf16 %v565_v56, %v553_v27  ;;  %v4568_v55 = vsub.f32 %v1513_v33, %v4553_v14  ;;  %v1717_v12 = vand.u32 4294901760, %v1716_v41  ;;  %v150_v10 = vsel %vm142_vm0, %v89_v3, 0  ;;  %v60_v33 = vld [vmem:[#allocation5 + $0x20] sm:$0xff] }
  0xcc   :  { %v1991_v59 = vsub.f32 %v6010_v39, %v6013_v8  ;;  %v570_v40 = vsub.f32 %v6011_v57, %v5715_v17  ;;  %v296_v2 = vand.u32 4294901760, %v295_v53  ;;  %v4578_v56 = vand.u32 4294901760, %v150_v10 }
  0xcd   :  { %6012 = vst [vmem:[#allocation115_spill] sm:$0xff] %v4568_v55  ;;  %3023 = vmatpush1.bf16.msra.mxu0 %v3022_v42  ;;  %v5717_v38 = vand.u32 4294901760, %v4568_v55  ;;  %1718 = vmatprep.mubr.f32.mxu1 %v1717_v12  ;;  %v5718_v8 = vand.u32 4294901760, %v6015_v36  ;;  %v1516_v41 = vmul.f32 %v4283_v32, %v61_v13  ;;  %v5722_v3 = vand.u32 4294901760, %v6016_v19 }
  0xce   :  { %v1992_v27 = vand.u32 4294901760, %v1991_v59  ;;  %6014 = vst [vmem:[#allocation117_spill] sm:$0xff] %v4578_v56  ;;  %v571_v4 = vand.u32 4294901760, %v570_v40  ;;  %297 = vmatmul.mubr.f32.gmra.mrb[2].mxu0 %v296_v2  ;;  %v4587_v17 = vsub.f32 %v150_v10, %v4578_v56  ;;  %v5726_v59 = vand.u32 4294901760, %v4063_v0 }
  0xcf   :  { %v1722_v53 = vsub.f32 %v4568_v55, %v5717_v38  ;;  %v582_v40 = vsub.f32 %v6015_v36, %v5718_v8  ;;  %v1577_v12 = vsel %vm142_vm0, %v1516_v41, 0  ;;  %v1997_v2 = vsub.f32 %v6016_v19, %v5722_v3  ;;  %v6020_v41 = vld [vmem:[#allocation122_spill] sm:$0xff] }
  0xd0   :  { %v3310_v42 = vpack.c.bf16 %v1992_v27, %v1980_v47  ;;  %6017 = vst [vmem:[#allocation118_spill] sm:$0xff] %v4587_v17  ;;  %v88_v13 = vmul.f32 %v4267_v58, %v60_v33  ;;  %v5729_v47 = vand.u32 4294901760, %v4587_v17  ;;  %v4599_v10 = vand.u32 4294901760, %v1577_v12 }
  0xd1   :  { %v1723_v63 = vand.u32 4294901760, %v1722_v53  ;;  %v2009_v27 = vsub.f32 %v4063_v0, %v5726_v59  ;;  %v583_v38 = vand.u32 4294901760, %v582_v40  ;;  %v1998_v8 = vand.u32 4294901760, %v1997_v2  ;;  %v63_v2 = vld [vmem:[#allocation5 + $0x38] sm:$0xff] }
  0xd2   :  { %3311 = vmatpush1.bf16.msra.mxu1 %v3310_v42  ;;  %6018 = vst [vmem:[#allocation119_spill] sm:$0xff] %v4599_v10  ;;  %v4604_v55 = vand.u32 4294901760, %v88_v13  ;;  %v5734_v43 = vand.u32 4294901760, %v6020_v41  ;;  %v305_v53 = vsub.f32 %v4587_v17, %v5729_v47  ;;  %v4611_v42 = vsub.f32 %v1577_v12, %v4599_v10 }
  0xd3   :  { %1724 = vmatmul.mubr.f32.gmra.mrb[2].mxu1 %v1723_v63  ;;  %v2010_v3 = vand.u32 4294901760, %v2009_v27  ;;  %v3024_v25 = vpack.c.bf16 %v583_v38, %v571_v4  ;;  %v1515_v63 = vmul.f32 %v4288_v6, %v60_v33  ;;  %v588_v12 = vsub.f32 %v6022_v54, %v5735_v1  ;;  %v6025_v27 = vld [vmem:[#allocation125_spill] sm:$0xff]  ;;  %v6028_v1 = vld [vmem:[#allocation128_spill] sm:$0xff] }
  0xd4   :  { %6019 = vst [vmem:[#allocation152_spill] sm:$0xff] %v4604_v55  ;;  %6021 = vst [vmem:[#allocation122_spill] sm:$0xff] %v4611_v42  ;;  %v4615_v59 = vsub.f32 %v88_v13, %v4604_v55  ;;  %v576_v40 = vsub.f32 %v6020_v41, %v5734_v43  ;;  %v306_v56 = vand.u32 4294901760, %v305_v53  ;;  %v5738_v47 = vand.u32 4294901760, %v4611_v42 }
  0xd5   :  { %v3312_v17 = vpack.c.bf16 %v2010_v3, %v1998_v8  ;;  %3025 = vmatprep.subr.bf16.mxu0 %v3024_v25  ;;  %v4626_v13 = vand.u32 4294901760, %v1515_v63  ;;  %v5748_v55 = vand.u32 4294901760, %v6025_v27  ;;  %v589_v53 = vand.u32 4294901760, %v588_v12  ;;  %v6026_v8 = vld [vmem:[#allocation126_spill] sm:$0xff] }
  0xd6   :  { %6023 = vst [vmem:[#allocation123_spill] sm:$0xff] %v4615_v59  ;;  %v5743_v4 = vand.u32 4294901760, %v4615_v59  ;;  %v577_v38 = vand.u32 4294901760, %v576_v40  ;;  %307 = vmatprep.mubr.f32.mxu0 %v306_v56  ;;  %v1732_v33 = vsub.f32 %v4611_v42, %v5738_v47  ;;  %v5749_v3 = vand.u32 4294901760, %v6026_v8 }
  0xd7   :  { %6024 = vst [vmem:[#allocation153_spill] sm:$0xff] %v4626_v13  ;;  %3313 = vmatprep.subr.bf16.mxu1 %v3312_v17  ;;  %v91_v43 = vmul.f32 %v4263_v46, %v63_v2  ;;  %v4638_v40 = vsub.f32 %v1515_v63, %v4626_v13  ;;  %v2003_v56 = vsub.f32 %v6025_v27, %v5748_v55  ;;  %v5752_v10 = vand.u32 4294901760, %v6028_v1 }
  0xd8   :  { %v311_v25 = vsub.f32 %v4615_v59, %v5743_v4  ;;  %v1733_v47 = vand.u32 4294901760, %v1732_v33  ;;  %v3026_v17 = vpack.c.bf16 %v589_v53, %v577_v38  ;;  %v2015_v12 = vsub.f32 %v6026_v8, %v5749_v3  ;;  %v6030_v38 = vld [vmem:[#allocation129_spill] sm:$0xff] }
  0xd9   :  { %6027 = vst [vmem:[#allocation125_spill] sm:$0xff] %v4638_v40  ;;  %v153_v42 = vsel %vm142_vm0, %v91_v43, 0  ;;  %v5754_v4 = vand.u32 4294901760, %v4638_v40  ;;  %v2004_v59 = vand.u32 4294901760, %v2003_v56  ;;  %v594_v33 = vsub.f32 %v6028_v1, %v5752_v10  ;;  %v6032_v56 = vld [vmem:[#allocation130_spill] sm:$0xff] }
  0xda   :  { %v312_v14 = vand.u32 4294901760, %v311_v25  ;;  %v4649_v63 = vand.u32 4294901760, %v153_v42  ;;  %1734 = vmatprep.mubr.f32.mxu1 %v1733_v47  ;;  %3027 = vmatpush1.bf16.msra.mxu0 %v3026_v17  ;;  %v2016_v13 = vand.u32 4294901760, %v2015_v12  ;;  %v5755_v53 = vand.u32 4294901760, %v6030_v38  ;;  %v62_v12 = vld [vmem:[#allocation5 + $0x30] sm:$0xff] }
  0xdb   :  { %v1518_v55 = vmul.f32 %v4283_v32, %v63_v2  ;;  %v1738_v43 = vsub.f32 %v4638_v40, %v5754_v4  ;;  %v5758_v47 = vand.u32 4294901760, %v6032_v56  ;;  %v595_v62 = vand.u32 4294901760, %v594_v33 }
  0xdc   :  { %6029 = vst [vmem:[#allocation126_spill] sm:$0xff] %v4649_v63  ;;  %313 = vmatmul.mubr.f32.gmra.mrb[4].mxu0 %v312_v14  ;;  %v4660_v25 = vsub.f32 %v153_v42, %v4649_v63  ;;  %v3314_v3 = vpack.c.bf16 %v2016_v13, %v2004_v59  ;;  %v606_v10 = vsub.f32 %v6030_v38, %v5755_v53  ;;  %v6034_v59 = vand.u32 4294901760, %v4091_v61 }
  0xdd   :  { %v1580_v14 = vsel %vm142_vm0, %v1518_v55, 0  ;;  %v1739_v2 = vand.u32 4294901760, %v1738_v43  ;;  %v2021_v42 = vsub.f32 %v6032_v56, %v5758_v47  ;;  %v90_v33 = vmul.f32 %v4267_v58, %v62_v12 }
  0xde   :  { %6031 = vst [vmem:[#allocation129_spill] sm:$0xff] %v4660_v25  ;;  %v5763_v1 = vand.u32 4294901760, %v4660_v25  ;;  %v4669_v4 = vand.u32 4294901760, %v1580_v14  ;;  %3315 = vmatpush1.bf16.msra.mxu1 %v3314_v3  ;;  %v607_v17 = vand.u32 4294901760, %v606_v10  ;;  %v2033_v13 = vsub.f32 %v4091_v61, %v6034_v59 }
  0xdf   :  { %v5766_v53 = vand.u32 4294901760, %v4095_v15  ;;  %1740 = vmatmul.mubr.f32.gmra.mrb[4].mxu1 %v1739_v2  ;;  %v2022_v40 = vand.u32 4294901760, %v2021_v42  ;;  %v5769_v3 = vand.u32 4294901760, %v4097_v28  ;;  %v4686_v63 = vand.u32 4294901760, %v90_v33  ;;  %v65_v42 = vld [vmem:[#allocation5 + $0x48] sm:$0xff] }
  0xe0   :  { %6033 = vst [vmem:[#allocation130_spill] sm:$0xff] %v4669_v4  ;;  %v321_v55 = vsub.f32 %v4660_v25, %v5763_v1  ;;  %v4683_v43 = vsub.f32 %v1580_v14, %v4669_v4  ;;  %v3028_v10 = vpack.c.bf16 %v607_v17, %v595_v62  ;;  %v2034_v47 = vand.u32 4294901760, %v2033_v13 }
  0xe1   :  { %6036 = vst [vmem:[#allocation155_spill] sm:$0xff] %v4686_v63  ;;  %v600_v59 = vsub.f32 %v4095_v15, %v5766_v53  ;;  %v612_v1 = vsub.f32 %v4097_v28, %v5769_v3  ;;  %v1517_v14 = vmul.f32 %v4288_v6, %v62_v12  ;;  %v4697_v62 = vsub.f32 %v90_v33, %v4686_v63  ;;  %v6038_v3 = vld [vmem:[#allocation136_spill] sm:$0xff] }
  0xe2   :  { %6035 = vst [vmem:[#allocation154_spill] sm:$0xff] %v4683_v43  ;;  %v322_v61 = vand.u32 4294901760, %v321_v55  ;;  %v5772_v2 = vand.u32 4294901760, %v4683_v43  ;;  %3029 = vmatprep.subr.bf16.mxu0 %v3028_v10  ;;  %v3316_v25 = vpack.c.bf16 %v2034_v47, %v2022_v40  ;;  %v5773_v13 = vand.u32 4294901760, %v4101_v26 }
  0xe3   :  { %v601_v17 = vand.u32 4294901760, %v600_v59  ;;  %v613_v53 = vand.u32 4294901760, %v612_v1  ;;  %v4703_v4 = vand.u32 4294901760, %v1517_v14  ;;  %v5774_v28 = vand.u32 4294901760, %v6038_v3 }
  0xe4   :  { %323 = vmatprep.mubr.f32.mxu0 %v322_v61  ;;  %v1748_v55 = vsub.f32 %v4683_v43, %v5772_v2  ;;  %3317 = vmatprep.subr.bf16.mxu1 %v3316_v25  ;;  %v5781_v12 = vand.u32 4294901760, %v4697_v62  ;;  %v2027_v40 = vsub.f32 %v4101_v26, %v5773_v13  ;;  %v93_v47 = vmul.f32 %v4263_v46, %v65_v42  ;;  %v64_v43 = vld [vmem:[#allocation5 + $0x40] sm:$0xff] }
  0xe5   :  { %6037 = vst [vmem:[#allocation156_spill] sm:$0xff] %v4703_v4  ;;  %v5783_v61 = vand.u32 4294901760, %v4109_v9  ;;  %v3030_v10 = vpack.c.bf16 %v613_v53, %v601_v17  ;;  %v4713_v59 = vsub.f32 %v1517_v14, %v4703_v4  ;;  %v2039_v1 = vsub.f32 %v6038_v3, %v5774_v28 }
  0xe6   :  { %v1749_v33 = vand.u32 4294901760, %v1748_v55  ;;  %v327_v25 = vsub.f32 %v4697_v62, %v5781_v12  ;;  %v2028_v2 = vand.u32 4294901760, %v2027_v40  ;;  %v156_v13 = vsel %vm142_vm0, %v93_v47, 0  ;;  %v6041_v55 = vld [vmem:[#allocation138_spill] sm:$0xff] }
  0xe7   :  { %6039 = vst [vmem:[#allocation136_spill] sm:$0xff] %v4713_v59  ;;  %v618_v46 = vsub.f32 %v4109_v9, %v5783_v61  ;;  %3031 = vmatpush1.bf16.msra.mxu0 %v3030_v10  ;;  %v5782_v53 = vand.u32 4294901760, %v4713_v59  ;;  %v2040_v14 = vand.u32 4294901760, %v2039_v1  ;;  %v4726_v17 = vand.u32 4294901760, %v156_v13 }
  0xe8   :  { %1750 = vmatprep.mubr.f32.mxu1 %v1749_v33  ;;  %v5785_v28 = vand.u32 4294901760, %v6041_v55  ;;  %v328_v4 = vand.u32 4294901760, %v327_v25  ;;  %v1520_v40 = vmul.f32 %v4283_v32, %v65_v42  ;;  %v5784_v47 = vand.u32 4294901760, %v4115_v35 }
  0xe9   :  { %6040 = vst [vmem:[#allocation157_spill] sm:$0xff] %v4726_v17  ;;  %v619_v63 = vand.u32 4294901760, %v618_v46  ;;  %v1754_v12 = vsub.f32 %v4713_v59, %v5782_v53  ;;  %v3318_v33 = vpack.c.bf16 %v2040_v14, %v2028_v2  ;;  %v4735_v10 = vsub.f32 %v156_v13, %v4726_v17 }
  0xea   :  { %v630_v1 = vsub.f32 %v6041_v55, %v5785_v28  ;;  %329 = vmatmul.mubr.f32.gmra.mrb[6].mxu0 %v328_v4  ;;  %v1583_v25 = vsel %vm142_vm0, %v1520_v40, 0  ;;  %v2045_v32 = vsub.f32 %v4115_v35, %v5784_v47  ;;  %v5786_v42 = vand.u32 4294901760, %v4120_v51 }
  0xeb   :  { %6042 = vst [vmem:[#allocation138_spill] sm:$0xff] %v4735_v10  ;;  %v92_v46 = vmul.f32 %v4267_v58, %v64_v43  ;;  %v1755_v53 = vand.u32 4294901760, %v1754_v12  ;;  %3319 = vmatpush1.bf16.msra.mxu1 %v3318_v33  ;;  %v5789_v2 = vand.u32 4294901760, %v4735_v10  ;;  %v4747_v14 = vand.u32 4294901760, %v1583_v25 }
  0xec   :  { %v631_v13 = vand.u32 4294901760, %v630_v1  ;;  %v2046_v61 = vand.u32 4294901760, %v2045_v32  ;;  %v2057_v4 = vsub.f32 %v4120_v51, %v5786_v42  ;;  %v5795_v47 = vand.u32 4294901760, %v4124_v49 }
  0xed   :  { %6043 = vst [vmem:[#allocation158_spill] sm:$0xff] %v4747_v14  ;;  %v4752_v40 = vand.u32 4294901760, %v92_v46  ;;  %1756 = vmatmul.mubr.f32.gmra.mrb[6].mxu1 %v1755_v53  ;;  %v337_v58 = vsub.f32 %v4735_v10, %v5789_v2  ;;  %v4759_v33 = vsub.f32 %v1583_v25, %v4747_v14  ;;  %v5794_v1 = vand.u32 4294901760, %v4126_v7 }
  0xee   :  { %v3032_v12 = vpack.c.bf16 %v631_v13, %v619_v63  ;;  %v2058_v32 = vand.u32 4294901760, %v2057_v4  ;;  %v624_v42 = vsub.f32 %v4124_v49, %v5795_v47  ;;  %v1519_v53 = vmul.f32 %v4288_v6, %v64_v43 }
  0xef   :  { %6044 = vst [vmem:[#allocation159_spill] sm:$0xff] %v4752_v40  ;;  %v4763_v28 = vsub.f32 %v92_v46, %v4752_v40  ;;  %v338_v59 = vand.u32 4294901760, %v337_v58  ;;  %v5792_v2 = vand.u32 4294901760, %v4759_v33  ;;  %v636_v63 = vsub.f32 %v4126_v7, %v5794_v1 }
  0xf0   :  { %3033 = vmatprep.subr.bf16.mxu0 %v3032_v12  ;;  %v5793_v25 = vand.u32 4294901760, %v4130_v5  ;;  %v3320_v13 = vpack.c.bf16 %v2058_v32, %v2046_v61  ;;  %v625_v4 = vand.u32 4294901760, %v624_v42  ;;  %v4775_v10 = vand.u32 4294901760, %v1519_v53 }
  0xf1   :  { %v5797_v46 = vand.u32 4294901760, %v4763_v28  ;;  %339 = vmatprep.mubr.f32.mxu0 %v338_v59  ;;  %v1764_v6 = vsub.f32 %v4759_v33, %v5792_v2  ;;  %v637_v43 = vand.u32 4294901760, %v636_v63  ;;  %v5798_v12 = vand.u32 4294901760, %v4132_v16 }
  0xf2   :  { %6045 = vst [vmem:[#allocation160_spill] sm:$0xff] %v4775_v10  ;;  %v2051_v58 = vsub.f32 %v4130_v5, %v5793_v25  ;;  %3321 = vmatprep.subr.bf16.mxu1 %v3320_v13  ;;  %v4788_v42 = vsub.f32 %v1519_v53, %v4775_v10  ;;  %v3036_v59 = vpack.c.bf16 %v3804_v21, %v3802_v20 }
  0xf3   :  { %v343_v61 = vsub.f32 %v4763_v28, %v5797_v46  ;;  %v1765_v32 = vand.u32 4294901760, %v1764_v6  ;;  %v3034_v2 = vpack.c.bf16 %v637_v43, %v625_v4  ;;  %v2063_v25 = vsub.f32 %v4132_v16, %v5798_v12  ;;  %v6046_v6 = vld [vmem:[#allocation14_spill] sm:$0xff]  ;;  %v6053_v46 = vld [vmem:[#allocation31_spill] sm:$0xff] }
  0xf4   :  { %v2052_v63 = vand.u32 4294901760, %v2051_v58  ;;  %v5796_v13 = vand.u32 4294901760, %v4788_v42  ;;  %v3324_v4 = vpack.c.bf16 %v6046_v6, %v3806_v22 }
  0xf5   :  { %v344_v1 = vand.u32 4294901760, %v343_v61  ;;  %1766 = vmatprep.mubr.f32.mxu1 %v1765_v32  ;;  %3035 = vmatpush1.bf16.msra.mxu0 %v3034_v2  ;;  %v2064_v47 = vand.u32 4294901760, %v2063_v25  ;;  %v3038_v61 = vpack.c.bf16 %v3817_v31, %v3814_v29  ;;  %v3040_v2 = vpack.c.bf16 %v3831_v50, %v3827_v45  ;;  %v6057_v50 = vld [vmem:[#allocation37_spill] sm:$0xff]  ;;  %v6058_v45 = vld [vmem:[#allocation39_spill] sm:$0xff]  ;;  %v6059_v31 = vld [vmem:[#allocation40_spill] sm:$0xff] }
  0xf6   :  { %v1770_v53 = vsub.f32 %v4788_v42, %v5796_v13  ;;  %3037 = vmatprep.subr.bf16.mxu0 %v3036_v59  ;;  %v6049_v59 = vld [vmem:[#allocation25_spill] sm:$0xff] }
  0xf7   :  { %345 = vmatmul.mubr.f32.gmra.mrb[8].mxu0 %v344_v1  ;;  %v3322_v43 = vpack.c.bf16 %v2064_v47, %v2052_v63  ;;  %v6047_v1 = vld [vmem:[#allocation18_spill] sm:$0xff]  ;;  %v6048_v47 = vld [vmem:[#allocation24_spill] sm:$0xff] }
  0xf8   :  { %656 = vmatprep.mubr.f32.mxu0 %v4297_v24  ;;  %v1771_v58 = vand.u32 4294901760, %v1770_v53  ;;  %v3326_v25 = vpack.c.bf16 %v3825_v44, %v6047_v1  ;;  %v3328_v32 = vpack.c.bf16 %v6049_v59, %v6048_v47  ;;  %v6050_v63 = vld [vmem:[#allocation26_spill] sm:$0xff]  ;;  %v6051_v53 = vld [vmem:[#allocation28_spill] sm:$0xff]  ;;  %v3046_v44 = vpack.c.bf16 %v6059_v31, %v6058_v45  ;;  %v6061_v59 = vld [vmem:[#allocation45_spill] sm:$0xff] }
  0xf9   :  { %3323 = vmatpush1.bf16.msra.mxu1 %v3322_v43  ;;  %v3042_v13 = vpack.c.bf16 %v6051_v53, %v6050_v63  ;;  %v6052_v43 = vld [vmem:[#allocation29_spill] sm:$0xff]  ;;  %v6062_v47 = vld [vmem:[#allocation46_spill] sm:$0xff]  ;;  %v6071_v31 = vld [vmem:[#allocation119_spill] sm:$0xff] }
  0xfa   :  { %1772 = vmatmul.mubr.f32.gmra.mrb[8].mxu1 %v1771_v58  ;;  %3325 = vmatprep.subr.bf16.mxu1 %v3324_v4  ;;  %v3330_v12 = vpack.c.bf16 %v6053_v46, %v6052_v43  ;;  %v6054_v58 = vld [vmem:[#allocation33_spill] sm:$0xff]  ;;  %v6055_v4 = vld [vmem:[#allocation34_spill] sm:$0xff]  ;;  %v3048_v53 = vpack.c.bf16 %v6062_v47, %v6061_v59  ;;  %v6063_v46 = vld [vmem:[#allocation128_spill] sm:$0xff] }
  0xfb   :  { %2083 = vmatprep.mubr.f32.mxu1 %v4313_v60  ;;  %658 = vmatmul.mubr.f32.vlgmr.msra.gmra.mrb[0].mxu0 %v4294_v34  ;;  %v3044_v24 = vpack.c.bf16 %v6055_v4, %v6054_v58  ;;  %v6056_v60 = vld [vmem:[#allocation36_spill] sm:$0xff]  ;;  %v6065_v59 = vld [vmem:[#allocation111_spill] sm:$0xff]  ;;  %v6074_v45 = vld [vmem:[#allocation50_spill] sm:$0xff] }
  0xfc   :  { %3039 = vmatpush1.bf16.msra.mxu0 %v3038_v61  ;;  %v3332_v34 = vpack.c.bf16 %v6057_v50, %v6056_v60  ;;  %664 = vmatprep.mubr.f32.mxu0 %v4504_v48  ;;  %v6060_v61 = vld [vmem:[#allocation145_spill] sm:$0xff]  ;;  %v6066_v48 = vld [vmem:[#allocation134_spill] sm:$0xff]  ;;  %v6075_v50 = vld [vmem:[#allocation52_spill] sm:$0xff] }
  0xfd   :  { %3041 = vmatprep.subr.bf16.mxu0 %v3040_v2  ;;  %v6068_v2 = vld [vmem:[#allocation117_spill] sm:$0xff]  ;;  %v3050_v43 = vpack.c.bf16 %v6075_v50, %v6074_v45  ;;  %v6078_v58 = vld [vmem:[#allocation152_spill] sm:$0xff]  ;;  %v6086_v45 = vld [vmem:[#allocation63_spill] sm:$0xff] }
  0xfe   :  { %2085 = vmatmul.mubr.f32.vlgmr.msra.gmra.mrb[0].mxu1 %v6060_v61  ;;  %v6069_v61 = vld [vmem:[#allocation42_spill] sm:$0xff]  ;;  %v6076_v60 = vld [vmem:[#allocation57_spill] sm:$0xff] }
  0xff   :  { %3327 = vmatpush1.bf16.msra.mxu1 %v3326_v25  ;;  %2091 = vmatprep.mubr.f32.mxu1 %v4528_v52  ;;  %v6064_v25 = vld [vmem:[#allocation132_spill] sm:$0xff]  ;;  %v6080_v52 = vld [vmem:[#allocation126_spill] sm:$0xff]  ;;  %v6085_v50 = vld [vmem:[#allocation61_spill] sm:$0xff] }
 0x100   :  { %3329 = vmatprep.subr.bf16.mxu1 %v3328_v32  ;;  %3043 = vmatpush1.bf16.msra.mxu0 %v3042_v13  ;;  %v6067_v32 = vld [vmem:[#allocation114_spill] sm:$0xff]  ;;  %v6072_v13 = vld [vmem:[#allocation48_spill] sm:$0xff] }
 0x101   :  { %3045 = vmatprep.subr.bf16.mxu0 %v3044_v24  ;;  %666 = vmatmul.mubr.f32.gmra.mrb[2].mxu0 %v6065_v59  ;;  %v6070_v59 = vld [vmem:[#allocation43_spill] sm:$0xff]  ;;  %v6077_v24 = vld [vmem:[#allocation58_spill] sm:$0xff] }
 0x102   :  { %2093 = vmatmul.mubr.f32.gmra.mrb[2].mxu1 %v6067_v32  ;;  %672 = vmatprep.mubr.f32.mxu0 %v6068_v2  ;;  %v3334_v47 = vpack.c.bf16 %v6070_v59, %v6069_v61  ;;  %v6073_v32 = vld [vmem:[#allocation49_spill] sm:$0xff]  ;;  %v3052_v4 = vpack.c.bf16 %v6077_v24, %v6076_v60  ;;  %v6083_v59 = vld [vmem:[#allocation130_spill] sm:$0xff]  ;;  %v6090_v61 = vld [vmem:[#allocation155_spill] sm:$0xff] }
 0x103   :  { %3331 = vmatpush1.bf16.msra.mxu1 %v3330_v12  ;;  %2099 = vmatprep.mubr.f32.mxu1 %v6071_v31  ;;  %v3336_v2 = vpack.c.bf16 %v6073_v32, %v6072_v13  ;;  %v6079_v12 = vld [vmem:[#allocation153_spill] sm:$0xff]  ;;  %v6081_v31 = vld [vmem:[#allocation54_spill] sm:$0xff]  ;;  %v6084_v32 = vld [vmem:[#allocation59_spill] sm:$0xff] }
 0x104   :  { %3333 = vmatprep.subr.bf16.mxu1 %v3332_v34  ;;  %3047 = vmatpush1.bf16.msra.mxu0 %v3046_v44  ;;  %v6082_v34 = vld [vmem:[#allocation55_spill] sm:$0xff]  ;;  %v6087_v13 = vld [vmem:[#allocation64_spill] sm:$0xff]  ;;  %v6089_v60 = vld [vmem:[#allocation70_spill] sm:$0xff] }
 0x105   :  { %3049 = vmatprep.subr.bf16.mxu0 %v3048_v53  ;;  %674 = vmatmul.mubr.f32.gmra.mrb[4].mxu0 %v6078_v58  ;;  %v3338_v44 = vpack.c.bf16 %v6082_v34, %v6081_v31  ;;  %v3340_v53 = vpack.c.bf16 %v6085_v50, %v6084_v32  ;;  %v3054_v24 = vpack.c.bf16 %v6087_v13, %v6086_v45  ;;  %v6088_v58 = vld [vmem:[#allocation69_spill] sm:$0xff]  ;;  %v6096_v45 = vld [vmem:[#allocation75_spill] sm:$0xff]  ;;  %v6097_v50 = vld [vmem:[#allocation76_spill] sm:$0xff] }
 0x106   :  { %2101 = vmatmul.mubr.f32.gmra.mrb[4].mxu1 %v6079_v12  ;;  %680 = vmatprep.mubr.f32.mxu0 %v6080_v52  ;;  %v3056_v12 = vpack.c.bf16 %v6089_v60, %v6088_v58  ;;  %v6094_v52 = vld [vmem:[#allocation71_spill] sm:$0xff]  ;;  %v6095_v13 = vld [vmem:[#allocation73_spill] sm:$0xff]  ;;  %v3058_v60 = vpack.c.bf16 %v6097_v50, %v6096_v45  ;;  %v6099_v58 = vld [vmem:[#allocation82_spill] sm:$0xff] }
 0x107   :  { %3335 = vmatpush1.bf16.msra.mxu1 %v3334_v47  ;;  %2107 = vmatprep.mubr.f32.mxu1 %v6083_v59  ;;  %v6091_v47 = vld [vmem:[#allocation156_spill] sm:$0xff]  ;;  %v6092_v59 = vld [vmem:[#allocation66_spill] sm:$0xff] }
 0x108   :  { %3337 = vmatprep.subr.bf16.mxu1 %v3336_v2  ;;  %3051 = vmatpush1.bf16.msra.mxu0 %v3050_v43  ;;  %v6093_v2 = vld [vmem:[#allocation67_spill] sm:$0xff]  ;;  %v6108_v50 = vld [vmem:[#allocation94_spill] sm:$0xff] }
 0x109   :  { %3053 = vmatprep.subr.bf16.mxu0 %v3052_v4  ;;  %682 = vmatmul.mubr.f32.gmra.mrb[6].mxu0 %v6090_v61  ;;  %v3342_v43 = vpack.c.bf16 %v6093_v2, %v6092_v59  ;;  %v3344_v4 = vpack.c.bf16 %v6095_v13, %v6094_v52  ;;  %v6098_v61 = vld [vmem:[#allocation81_spill] sm:$0xff]  ;;  %v6102_v2 = vld [vmem:[#allocation83_spill] sm:$0xff]  ;;  %v6106_v13 = vld [vmem:[#allocation146_spill] sm:$0xff] }
 0x10a   :  { %2109 = vmatmul.mubr.f32.gmra.mrb[6].mxu1 %v6091_v47  ;;  %688 = vmatprep.mubr.f32.mxu0 %v4726_v17  ;;  %v3060_v47 = vpack.c.bf16 %v6099_v58, %v6098_v61  ;;  %v6101_v17 = vld [vmem:[#allocation79_spill] sm:$0xff]  ;;  %v6103_v59 = vld [vmem:[#allocation85_spill] sm:$0xff]  ;;  %v6150_v52 = vld [vmem:[#allocation102_spill] sm:$0xff] }
 0x10b   :  { %3339 = vmatpush1.bf16.msra.mxu1 %v3338_v44  ;;  %2115 = vmatprep.mubr.f32.mxu1 %v4747_v14  ;;  %v6100_v44 = vld [vmem:[#allocation78_spill] sm:$0xff]  ;;  %v3348_v14 = vpack.c.bf16 %v6103_v59, %v6102_v2  ;;  %v6109_v58 = vld [vmem:[#allocation149_spill] sm:$0xff]  ;;  %v6113_v59 = vand.u32 4294901760, %v6020_v41  ;;  %v6120_v2 = vand.u32 4294901760, %v6030_v38 }
 0x10c   :  { %3341 = vmatprep.subr.bf16.mxu1 %v3340_v53  ;;  %3055 = vmatpush1.bf16.msra.mxu0 %v3054_v24  ;;  %v3346_v32 = vpack.c.bf16 %v6101_v17, %v6100_v44  ;;  %v6104_v53 = vld [vmem:[#allocation87_spill] sm:$0xff]  ;;  %v6105_v24 = vld [vmem:[#allocation88_spill] sm:$0xff]  ;;  %v6111_v17 = vand.u32 4294901760, %v4063_v0 }
 0x10d   :  { %3057 = vmatprep.subr.bf16.mxu0 %v3056_v12  ;;  %690 = vmatmul.mubr.f32.gmra.mrb[8].mxu0 %v4752_v40  ;;  %v3062_v34 = vpack.c.bf16 %v6105_v24, %v6104_v53  ;;  %v6107_v12 = vld [vmem:[#allocation93_spill] sm:$0xff]  ;;  %v6110_v40 = vand.u32 4294901760, %v6016_v19  ;;  %v6114_v24 = vand.u32 4294901760, %v6022_v54 }
 0x10e   :  { %2117 = vmatmul.mubr.f32.gmra.mrb[8].mxu1 %v4775_v10  ;;  %858 = vmatprep.mubr.f32.mxu0 %v6106_v13  ;;  %v3064_v45 = vpack.c.bf16 %v6108_v50, %v6107_v12  ;;  %v6117_v10 = vand.u32 4294901760, %v6026_v8  ;;  %v6119_v12 = vand.u32 4294901760, %v6063_v46 }
 0x10f   :  { %3343 = vmatpush1.bf16.msra.mxu1 %v3342_v43  ;;  %2285 = vmatprep.mubr.f32.mxu1 %v6109_v58  ;;  %v4909_v44 = vpack.c.bf16 %v6111_v17, %v6110_v40  ;;  %v4915_v53 = vpack.c.bf16 %v6114_v24, %v6113_v59  ;;  %v6116_v43 = vand.u32 4294901760, %v6025_v27  ;;  %v6122_v40 = vand.u32 4294901760, %v6032_v56 }
 0x110   :  { %3345 = vmatprep.subr.bf16.mxu1 %v3344_v4  ;;  %3059 = vmatpush1.bf16.msra.mxu0 %v3058_v60  ;;  %v4927_v17 = vpack.c.bf16 %v6120_v2, %v6119_v12  ;;  %v6125_v60 = vand.u32 4294901760, %v4095_v15  ;;  %v6126_v4 = vand.u32 4294901760, %v6066_v48  ;;  %v6131_v2 = vand.u32 4294901760, %v4109_v9 }
 0x111   :  { %6112 = vst [vmem:[#allocation14_spill] sm:$0xff] %v4909_v44  ;;  %6115 = vst [vmem:[#allocation18_spill] sm:$0xff] %v4915_v53  ;;  %v4921_v50 = vpack.c.bf16 %v6117_v10, %v6116_v43  ;;  %v6123_v44 = vand.u32 4294901760, %v6064_v25  ;;  %3061 = vmatprep.subr.bf16.mxu0 %v3060_v47  ;;  %v6128_v10 = vand.u32 4294901760, %v4101_v26  ;;  %v6129_v43 = vand.u32 4294901760, %v6038_v3  ;;  %v6147_v53 = vld [vmem:[#allocation100_spill] sm:$0xff] }
 0x112   :  { %6121 = vst [vmem:[#allocation128_spill] sm:$0xff] %v4927_v17  ;;  %v4939_v24 = vpack.c.bf16 %v6126_v4, %v6125_v60  ;;  %v6132_v12 = vand.u32 4294901760, %v6041_v55  ;;  %v6134_v47 = vand.u32 4294901760, %v4115_v35  ;;  %v6137_v60 = vand.u32 4294901760, %v4124_v49 }
 0x113   :  { %6118 = vst [vmem:[#allocation26_spill] sm:$0xff] %v4921_v50  ;;  %v4933_v59 = vpack.c.bf16 %v6123_v44, %v6122_v40  ;;  %v4945_v50 = vpack.c.bf16 %v6129_v43, %v6128_v10  ;;  %v6135_v44 = vand.u32 4294901760, %v4120_v51  ;;  %v6138_v4 = vand.u32 4294901760, %v4126_v7  ;;  %3347 = vmatpush1.bf16.msra.mxu1 %v3346_v32 }
 0x114   :  { %6127 = vst [vmem:[#allocation134_spill] sm:$0xff] %v4939_v24  ;;  %v4951_v17 = vpack.c.bf16 %v6132_v12, %v6131_v2  ;;  %v6140_v10 = vand.u32 4294901760, %v4130_v5  ;;  %v6141_v43 = vand.u32 4294901760, %v4132_v16  ;;  %v6142_v2 = vld [vmem:[#allocation90_spill] sm:$0xff]  ;;  %v6143_v12 = vld [vmem:[#allocation91_spill] sm:$0xff]  ;;  %3349 = vmatprep.subr.bf16.mxu1 %v3348_v14  ;;  %3063 = vmatpush1.bf16.msra.mxu0 %v3062_v34  ;;  %v6152_v14 = vpack.c.bf16 %v6000_v23, %v5999_v11 }
 0x115   :  { %6124 = vst [vmem:[#allocation132_spill] sm:$0xff] %v4933_v59  ;;  %6130 = vst [vmem:[#allocation54_spill] sm:$0xff] %v4945_v50  ;;  %v4957_v40 = vpack.c.bf16 %v6135_v44, %v6134_v47  ;;  %v4963_v24 = vpack.c.bf16 %v6138_v4, %v6137_v60  ;;  %v6144_v47 = vld [vmem:[#allocation95_spill] sm:$0xff]  ;;  %v6145_v44 = vld [vmem:[#allocation97_spill] sm:$0xff]  ;;  %3065 = vmatprep.subr.bf16.mxu0 %v3064_v45  ;;  %v6153_v32 = vpack.c.bf16 %v6005_v18, %v6003_v37 }
 0x116   :  { %6133 = vst [vmem:[#allocation146_spill] sm:$0xff] %v4951_v17  ;;  %v4969_v50 = vpack.c.bf16 %v6141_v43, %v6140_v10  ;;  %v3350_v17 = vpack.c.bf16 %v6143_v12, %v6142_v2  ;;  %v6146_v59 = vld [vmem:[#allocation99_spill] sm:$0xff]  ;;  %v6148_v60 = vld [vmem:[#allocation105_spill] sm:$0xff]  ;;  %v6149_v4 = vld [vmem:[#allocation106_spill] sm:$0xff]  ;;  %v6154_v45 = vpack.c.bf16 %v6015_v36, %v6011_v57  ;;  %v6155_v34 = vpack.c.bf16 %v6010_v39, %v6008_v30 }
 0x117   :  { %6136 = vst [vmem:[#allocation149_spill] sm:$0xff] %v4957_v40  ;;  %6139 = vst [vmem:[#allocation161_spill] sm:$0xff] %v4963_v24  ;;  %v3352_v40 = vpack.c.bf16 %v6145_v44, %v6144_v47  ;;  %v3066_v61 = vpack.c.bf16 %v6147_v53, %v6146_v59  ;;  %v3068_v24 = vpack.c.bf16 %v6149_v4, %v6148_v60  ;;  %v6151_v10 = vld [vmem:[#allocation103_spill] sm:$0xff] }
 0x118   :  { %3351 = vmatpush1.bf16.msra.mxu1 %v3350_v17  ;;  %v3354_v43 = vpack.c.bf16 %v6151_v10, %v6150_v52  ;;  %v6157_v17 = vpack.c.bf16 %v6022_v54, %v6020_v41  ;;  %v6162_v54 = vpack.c.bf16 %v6041_v55, %v4109_v9  ;;  %v6164_v41 = vpack.c.bf16 %v4120_v51, %v4115_v35  ;;  %v6168_v9 = vld [vmem:[#allocation144_spill] sm:$0xff]  ;;  %v6172_v35 = vld [vmem:[#allocation107_spill] sm:$0xff] }
 0x119   :  { %3353 = vmatprep.subr.bf16.mxu1 %v3352_v40  ;;  %3067 = vmatpush1.bf16.msra.mxu0 %v3066_v61  ;;  %v6156_v61 = vpack.c.bf16 %v4063_v0, %v6016_v19  ;;  %v6159_v40 = vpack.c.bf16 %v6026_v8, %v6025_v27  ;;  %v6161_v0 = vpack.c.bf16 %v6066_v48, %v4095_v15  ;;  %v6166_v8 = vld [vmem:[#allocation12_spill] sm:$0xff]  ;;  %v6169_v48 = vld [vmem:[#allocation13_spill] sm:$0xff]  ;;  %v6180_v55 = vld [vmem:[#allocation115_spill] sm:$0xff] }
 0x11a   :  { %3069 = vmatprep.subr.bf16.mxu0 %v3068_v24  ;;  %v6158_v24 = vpack.c.bf16 %v6030_v38, %v6063_v46  ;;  %v6163_v19 = vpack.c.bf16 %v6038_v3, %v4101_v26  ;;  %v6165_v27 = vpack.c.bf16 %v4126_v7, %v4124_v49  ;;  %v6167_v15 = vpack.c.bf16 %v4132_v16, %v4130_v5  ;;  %v6170_v26 = vld [vmem:[#allocation15_spill] sm:$0xff]  ;;  %v6171_v38 = vld [vmem:[#allocation21_spill] sm:$0xff]  ;;  %v6173_v51 = vld [vmem:[#allocation148_spill] sm:$0xff] }
 0x11b   :  { %v6174_v7 = vld [vmem:[#allocation17_spill] sm:$0xff]  ;;  %v6175_v49 = vld [vmem:[#allocation112_spill] sm:$0xff]  ;;  %v6177_v5 = vld [vmem:[#allocation27_spill] sm:$0xff] }
 0x11c   :  { %3355 = vmatpush1.bf16.msra.mxu1 %v3354_v43  ;;  %v6160_v43 = vpack.c.bf16 %v6064_v25, %v6032_v56  ;;  %v6176_v56 = vld [vmem:[#allocation23_spill] sm:$0xff]  ;;  %v6178_v16 = vld [vmem:[#allocation32_spill] sm:$0xff]  ;;  %v6181_v46 = vld [vmem:[#allocation118_spill] sm:$0xff] }
 0x11d   :  { %3357 = vmatprep.subr.bf16.mxu1 %v6152_v14  ;;  %3071 = vmatpush1.bf16.msra.mxu0 %v6153_v32  ;;  %v6179_v3 = vld [vmem:[#allocation151_spill] sm:$0xff]  ;;  %v6182_v25 = vld [vmem:[#allocation30_spill] sm:$0xff] }
 0x11e   :  { %3073 = vmatprep.subr.bf16.mxu0 %v6154_v45  ;;  %v6183_v14 = vld [vmem:[#allocation122_spill] sm:$0xff]  ;;  %v6184_v32 = vld [vmem:[#allocation35_spill] sm:$0xff] }
 0x11f   :  { %v6185_v45 = vld [vmem:[#allocation38_spill] sm:$0xff] }
 0x120   :  { %3359 = vmatpush1.bf16.msra.mxu1 %v6155_v34  ;;  %v6186_v34 = vld [vmem:[#allocation44_spill] sm:$0xff] }
 0x121   :  { %3361 = vmatprep.subr.bf16.mxu1 %v6156_v61  ;;  %3075 = vmatpush1.bf16.msra.mxu0 %v6157_v17  ;;  %v6187_v61 = vld [vmem:[#allocation123_spill] sm:$0xff]  ;;  %v6188_v17 = vld [vmem:[#allocation125_spill] sm:$0xff] }
 0x122   :  { %3077 = vmatprep.subr.bf16.mxu0 %v6158_v24  ;;  %v6189_v24 = vld [vmem:[#allocation129_spill] sm:$0xff] }
 0x124   :  { %3363 = vmatpush1.bf16.msra.mxu1 %v6159_v40  ;;  %v6190_v40 = vld [vmem:[#allocation41_spill] sm:$0xff] }
 0x125   :  { %3365 = vmatprep.subr.bf16.mxu1 %v6160_v43  ;;  %3079 = vmatpush1.bf16.msra.mxu0 %v6161_v0  ;;  %v6191_v43 = vld [vmem:[#allocation154_spill] sm:$0xff]  ;;  %v6192_v0 = vld [vmem:[#allocation47_spill] sm:$0xff] }
 0x126   :  { %3081 = vmatprep.subr.bf16.mxu0 %v6162_v54  ;;  %v6193_v54 = vld [vmem:[#allocation51_spill] sm:$0xff] }
 0x128   :  { %3367 = vmatpush1.bf16.msra.mxu1 %v6163_v19  ;;  %v6194_v19 = vld [vmem:[#allocation56_spill] sm:$0xff] }
 0x129   :  { %3369 = vmatprep.subr.bf16.mxu1 %v6164_v41  ;;  %3083 = vmatpush1.bf16.msra.mxu0 %v6165_v27  ;;  %v6195_v41 = vld [vmem:[#allocation136_spill] sm:$0xff]  ;;  %v6196_v27 = vld [vmem:[#allocation138_spill] sm:$0xff] }
 0x12a   :  { %3085 = vmatprep.subr.bf16.mxu0 %v6166_v8 }
 0x12c   :  { %3371 = vmatpush1.bf16.msra.mxu1 %v6167_v15  ;;  %861 = vmatmul.mubr.f32.vlgmr.msra.gmra.mrb[0].mxu0 %v6168_v9  ;;  %v6197_v15 = vld [vmem:[#allocation53_spill] sm:$0xff] }
 0x12d   :  { %3373 = vmatprep.subr.bf16.mxu1 %v6169_v48  ;;  %3087 = vmatpush1.bf16.msra.mxu0 %v6170_v26 }
 0x12e   :  { %3089 = vmatprep.subr.bf16.mxu0 %v6171_v38  ;;  %868 = vmatprep.mubr.f32.mxu0 %v6172_v35 }
 0x12f   :  { %2288 = vmatmul.mubr.f32.vlgmr.msra.gmra.mrb[0].mxu1 %v6173_v51 }
 0x130   :  { %3375 = vmatpush1.bf16.msra.mxu1 %v6174_v7  ;;  %2295 = vmatprep.mubr.f32.mxu1 %v6175_v49 }
 0x131   :  { %3377 = vmatprep.subr.bf16.mxu1 %v6176_v56  ;;  %3091 = vmatpush1.bf16.msra.mxu0 %v6177_v5  ;;  %v6241_v56 = vld [vmem:[#allocation141_spill] sm:$0xff] }
 0x132   :  { %3093 = vmatprep.subr.bf16.mxu0 %v6178_v16  ;;  %871 = vmatmul.mubr.f32.gmra.mrb[2].mxu0 %v6179_v3  ;;  %v6210_v16 = vld [vmem:[#allocation92_spill] sm:$0xff] }
 0x133   :  { %2298 = vmatmul.mubr.f32.gmra.mrb[2].mxu1 %v6180_v55  ;;  %878 = vmatprep.mubr.f32.mxu0 %v6181_v46 }
 0x134   :  { %3379 = vmatpush1.bf16.msra.mxu1 %v6182_v25  ;;  %2305 = vmatprep.mubr.f32.mxu1 %v6183_v14  ;;  %v6209_v25 = vld [vmem:[#allocation86_spill] sm:$0xff] }
 0x135   :  { %3381 = vmatprep.subr.bf16.mxu1 %v6184_v32  ;;  %3095 = vmatpush1.bf16.msra.mxu0 %v6185_v45  ;;  %v6200_v45 = vld [vmem:[#allocation68_spill] sm:$0xff]  ;;  %v6205_v32 = vld [vmem:[#allocation74_spill] sm:$0xff] }
 0x136   :  { %3097 = vmatprep.subr.bf16.mxu0 %v6186_v34  ;;  %881 = vmatmul.mubr.f32.gmra.mrb[4].mxu0 %v6187_v61  ;;  %v6198_v34 = vld [vmem:[#allocation60_spill] sm:$0xff] }
 0x137   :  { %2308 = vmatmul.mubr.f32.gmra.mrb[4].mxu1 %v6188_v17  ;;  %888 = vmatprep.mubr.f32.mxu0 %v6189_v24 }
 0x138   :  { %3383 = vmatpush1.bf16.msra.mxu1 %v6190_v40  ;;  %2315 = vmatprep.mubr.f32.mxu1 %v6191_v43  ;;  %v6199_v40 = vld [vmem:[#allocation62_spill] sm:$0xff] }
 0x139   :  { %3385 = vmatprep.subr.bf16.mxu1 %v6192_v0  ;;  %3099 = vmatpush1.bf16.msra.mxu0 %v6193_v54  ;;  %v6202_v54 = vld [vmem:[#allocation65_spill] sm:$0xff]  ;;  %v6203_v0 = vand.u32 4294901760, %v6109_v58  ;;  %v6213_v58 = vld [vmem:[#allocation98_spill] sm:$0xff] }
 0x13a   :  { %3101 = vmatprep.subr.bf16.mxu0 %v6194_v19  ;;  %891 = vmatmul.mubr.f32.gmra.mrb[6].mxu0 %v4697_v62  ;;  %v6201_v19 = vand.u32 4294901760, %v6106_v13  ;;  %v6211_v13 = vld [vmem:[#allocation89_spill] sm:$0xff] }
 0x13b   :  { %2318 = vmatmul.mubr.f32.gmra.mrb[6].mxu1 %v6195_v41  ;;  %898 = vmatprep.mubr.f32.mxu0 %v6196_v27 }
 0x13c   :  { %3387 = vmatpush1.bf16.msra.mxu1 %v6197_v15  ;;  %2325 = vmatprep.mubr.f32.mxu1 %v4759_v33  ;;  %v6204_v15 = vld [vmem:[#allocation72_spill] sm:$0xff] }
 0x13d   :  { %3389 = vmatprep.subr.bf16.mxu1 %v6198_v34  ;;  %3103 = vmatpush1.bf16.msra.mxu0 %v6199_v40  ;;  %v6206_v34 = vld [vmem:[#allocation80_spill] sm:$0xff]  ;;  %v6207_v40 = vld [vmem:[#allocation77_spill] sm:$0xff] }
 0x13e   :  { %3105 = vmatprep.subr.bf16.mxu0 %v6200_v45  ;;  %901 = vmatmul.mubr.f32.gmra.mrb[8].mxu0 %v4763_v28  ;;  %v6208_v45 = vld [vmem:[#allocation84_spill] sm:$0xff] }
 0x13f   :  { %2328 = vmatmul.mubr.f32.gmra.mrb[8].mxu1 %v4788_v42  ;;  %1022 = vmatprep.mubr.f32.mxu0 %v6201_v19  ;;  %v6212_v19 = vld [vmem:[#allocation96_spill] sm:$0xff] }
 0x140   :  { %3391 = vmatpush1.bf16.msra.mxu1 %v6202_v54  ;;  %2449 = vmatprep.mubr.f32.mxu1 %v6203_v0  ;;  %v6214_v0 = vld [vmem:[#allocation104_spill] sm:$0xff] }
 0x141   :  { %3393 = vmatprep.subr.bf16.mxu1 %v6204_v15  ;;  %3107 = vmatpush1.bf16.msra.mxu0 %v6205_v32  ;;  %v6215_v15 = vld [vmem:[#allocation101_spill] sm:$0xff]  ;;  %v6216_v32 = vld [vmem:[#allocation108_spill] sm:$0xff] }
 0x142   :  { %3109 = vmatprep.subr.bf16.mxu0 %v6206_v34  ;;  %v6217_v34 = vld [vmem:[#allocation110_spill] sm:$0xff]  ;;  %v6235_v54 = vld [vmem:[#allocation16_spill] sm:$0xff] }
 0x144   :  { %3395 = vmatpush1.bf16.msra.mxu1 %v6207_v40  ;;  %v6218_v40 = vld [vmem:[#allocation116_spill] sm:$0xff] }
 0x145   :  { %3397 = vmatprep.subr.bf16.mxu1 %v6208_v45  ;;  %3111 = vmatpush1.bf16.msra.mxu0 %v6209_v25  ;;  %v6219_v45 = vld [vmem:[#allocation113_spill] sm:$0xff]  ;;  %v6220_v25 = vld [vmem:[#allocation120_spill] sm:$0xff] }
 0x146   :  { %3113 = vmatprep.subr.bf16.mxu0 %v6210_v16  ;;  %v6221_v16 = vld [vmem:[#allocation121_spill] sm:$0xff] }
 0x148   :  { %3399 = vmatpush1.bf16.msra.mxu1 %v6211_v13  ;;  %v6222_v13 = vld [vmem:[#allocation127_spill] sm:$0xff] }
 0x149   :  { %3401 = vmatprep.subr.bf16.mxu1 %v6212_v19  ;;  %3115 = vmatpush1.bf16.msra.mxu0 %v6213_v58  ;;  %v6223_v19 = vld [vmem:[#allocation124_spill] sm:$0xff]  ;;  %v6224_v58 = vld [vmem:[#allocation131_spill] sm:$0xff] }
 0x14a   :  { %3117 = vmatprep.subr.bf16.mxu0 %v6214_v0  ;;  %v6225_v0 = vld [vmem:[#allocation133_spill] sm:$0xff] }
 0x14c   :  { %3403 = vmatpush1.bf16.msra.mxu1 %v6215_v15  ;;  %v6226_v15 = vld [vmem:[#allocation137_spill] sm:$0xff] }
 0x14d   :  { %3405 = vmatprep.subr.bf16.mxu1 %v6216_v32  ;;  %3119 = vmatpush1.bf16.msra.mxu0 %v6217_v34  ;;  %v6227_v34 = vand.u32 4294901760, %v3802_v20  ;;  %v6237_v20 = vld [vmem:[#allocation20_spill] sm:$0xff] }
 0x14e   :  { %3121 = vmatprep.subr.bf16.mxu0 %v6218_v40  ;;  %v6228_v40 = vand.u32 4294901760, %v3804_v21  ;;  %v6238_v21 = vand.u32 4294901760, %v6237_v20  ;;  %v6250_v20 = vand.u32 4294901760, %v6050_v63 }
 0x150   :  { %3407 = vmatpush1.bf16.msra.mxu1 %v6219_v45  ;;  %v3132_v32 = vpack.c.bf16 %v6228_v40, %v6227_v34  ;;  %v6229_v45 = vld [vmem:[#allocation135_spill] sm:$0xff]  ;;  %v6239_v34 = vld [vmem:[#allocation22_spill] sm:$0xff] }
 0x151   :  { %3409 = vmatprep.subr.bf16.mxu1 %v6220_v25  ;;  %3123 = vmatpush1.bf16.msra.mxu0 %v6221_v16  ;;  %v6230_v25 = vld [vmem:[#allocation139_spill] sm:$0xff]  ;;  %v6231_v16 = vld [vmem:[#allocation140_spill] sm:$0xff]  ;;  %v6240_v40 = vand.u32 4294901760, %v6239_v34 }
 0x152   :  { %3125 = vmatprep.subr.bf16.mxu0 %v6222_v13  ;;  %v6232_v13 = vand.u32 4294901760, %v3806_v22  ;;  %v6243_v22 = vand.u32 4294901760, %v6047_v1 }
 0x154   :  { %3411 = vmatpush1.bf16.msra.mxu1 %v6223_v19  ;;  %v6233_v19 = vand.u32 4294901760, %v6046_v6  ;;  %v6244_v6 = vld [vmem:[#allocation19_spill] sm:$0xff] }
 0x155   :  { %3413 = vmatprep.subr.bf16.mxu1 %v6224_v58  ;;  %3127 = vmatpush1.bf16.msra.mxu0 %v6225_v0  ;;  %v6234_v0 = vand.u32 4294901760, %v3814_v29  ;;  %v6246_v29 = vld [vmem:[#allocation24_spill] sm:$0xff] }
 0x156   :  { %3129 = vmatprep.subr.bf16.mxu0 %v6226_v15  ;;  %v3420_v58 = vpack.c.bf16 %v6233_v19, %v6232_v13  ;;  %v6236_v15 = vand.u32 4294901760, %v6235_v54  ;;  %v6245_v13 = vand.u32 4294901760, %v6244_v6  ;;  %v6247_v54 = vand.u32 4294901760, %v6246_v29 }
 0x158   :  { %3415 = vmatpush1.bf16.msra.mxu1 %v6229_v45  ;;  %v3134_v5 = vpack.c.bf16 %v6236_v15, %v6234_v0  ;;  %v3136_v45 = vpack.c.bf16 %v6240_v40, %v6238_v21  ;;  %v3422_v19 = vpack.c.bf16 %v6245_v13, %v6243_v22  ;;  %v6251_v21 = vld [vmem:[#allocation28_spill] sm:$0xff]  ;;  %v6257_v22 = vand.u32 4294901760, %v6172_v35  ;;  %v6261_v13 = vld [vmem:[#allocation31_spill] sm:$0xff] }
 0x159   :  { %3417 = vmatprep.subr.bf16.mxu1 %v6230_v25  ;;  %3131 = vmatpush1.bf16.msra.mxu0 %v6231_v16  ;;  %v6242_v16 = vand.u32 4294901760, %v6168_v9  ;;  %v6252_v34 = vand.u32 4294901760, %v6251_v21  ;;  %v6253_v9 = vld [vmem:[#allocation33_spill] sm:$0xff]  ;;  %v6262_v63 = vand.u32 4294901760, %v6261_v13  ;;  %v6281_v13 = vld [vmem:[#allocation43_spill] sm:$0xff] }
 0x15a   :  { %3133 = vmatprep.subr.bf16.mxu0 %v3132_v32  ;;  %v6248_v32 = vld [vmem:[#allocation25_spill] sm:$0xff] }
 0x15b   :  { %v6249_v15 = vand.u32 4294901760, %v6248_v32  ;;  %v3138_v40 = vpack.c.bf16 %v6252_v34, %v6250_v20  ;;  %v6266_v32 = vld [vmem:[#allocation37_spill] sm:$0xff]  ;;  %v6268_v20 = vld [vmem:[#allocation39_spill] sm:$0xff] }
 0x15c   :  { %3419 = vmatpush1.bf16.msra.mxu1 %v6241_v56  ;;  %1026 = vmatmul.mubr.f32.vlgmr.msra.gmra.mrb[0].mxu0 %v6242_v16  ;;  %v6254_v16 = vand.u32 4294901760, %v6253_v9  ;;  %v6255_v56 = vld [vmem:[#allocation34_spill] sm:$0xff]  ;;  %v6269_v21 = vand.u32 4294901760, %v6268_v20  ;;  %v6272_v9 = vld [vmem:[#allocation45_spill] sm:$0xff] }
 0x15d   :  { %3421 = vmatprep.subr.bf16.mxu1 %v3420_v58  ;;  %3135 = vmatpush1.bf16.msra.mxu0 %v3134_v5  ;;  %v3424_v0 = vpack.c.bf16 %v6249_v15, %v6247_v54  ;;  %v6256_v1 = vand.u32 4294901760, %v6255_v56  ;;  %v6258_v5 = vand.u32 4294901760, %v6173_v51  ;;  %v6259_v58 = vld [vmem:[#allocation29_spill] sm:$0xff]  ;;  %v6263_v54 = vand.u32 4294901760, %v6175_v49  ;;  %v6270_v51 = vld [vmem:[#allocation40_spill] sm:$0xff] }
 0x15e   :  { %3137 = vmatprep.subr.bf16.mxu0 %v3136_v45  ;;  %1034 = vmatprep.mubr.f32.mxu0 %v6257_v22  ;;  %v6260_v6 = vand.u32 4294901760, %v6259_v58  ;;  %v6264_v45 = vld [vmem:[#allocation36_spill] sm:$0xff]  ;;  %v6267_v15 = vand.u32 4294901760, %v6266_v32  ;;  %v6271_v34 = vand.u32 4294901760, %v6270_v51  ;;  %v6276_v49 = vand.u32 4294901760, %v6179_v3  ;;  %v6279_v58 = vld [vmem:[#allocation42_spill] sm:$0xff] }
 0x15f   :  { %v3140_v25 = vpack.c.bf16 %v6256_v1, %v6254_v16  ;;  %2453 = vmatmul.mubr.f32.vlgmr.msra.gmra.mrb[0].mxu1 %v6258_v5  ;;  %v6265_v56 = vand.u32 4294901760, %v6264_v45  ;;  %v6273_v16 = vand.u32 4294901760, %v6272_v9  ;;  %v6274_v1 = vld [vmem:[#allocation46_spill] sm:$0xff]  ;;  %v6284_v45 = vld [vmem:[#allocation48_spill] sm:$0xff]  ;;  %v6292_v51 = vld [vmem:[#allocation57_spill] sm:$0xff] }
 0x160   :  { %3423 = vmatpush1.bf16.msra.mxu1 %v3422_v19  ;;  %v3426_v29 = vpack.c.bf16 %v6262_v63, %v6260_v6  ;;  %2461 = vmatprep.mubr.f32.mxu1 %v6263_v54  ;;  %v3142_v19 = vpack.c.bf16 %v6271_v34, %v6269_v21  ;;  %v6275_v22 = vand.u32 4294901760, %v6274_v1  ;;  %v6280_v6 = vand.u32 4294901760, %v6279_v58  ;;  %v6294_v9 = vld [vmem:[#allocation58_spill] sm:$0xff]  ;;  %v6303_v58 = vld [vmem:[#allocation59_spill] sm:$0xff] }
 0x161   :  { %3425 = vmatprep.subr.bf16.mxu1 %v3424_v0  ;;  %3139 = vmatpush1.bf16.msra.mxu0 %v3138_v40  ;;  %v3428_v35 = vpack.c.bf16 %v6267_v15, %v6265_v56  ;;  %v6277_v0 = vand.u32 4294901760, %v6180_v55  ;;  %v6278_v40 = vand.u32 4294901760, %v6181_v46  ;;  %v6282_v63 = vand.u32 4294901760, %v6281_v13  ;;  %v6286_v56 = vld [vmem:[#allocation49_spill] sm:$0xff]  ;;  %v6288_v15 = vld [vmem:[#allocation50_spill] sm:$0xff]  ;;  %v6290_v46 = vld [vmem:[#allocation52_spill] sm:$0xff] }
 0x162   :  { %3141 = vmatprep.subr.bf16.mxu0 %v3140_v25  ;;  %v3144_v5 = vpack.c.bf16 %v6275_v22, %v6273_v16  ;;  %1038 = vmatmul.mubr.f32.gmra.mrb[2].mxu0 %v6276_v49  ;;  %v6283_v54 = vand.u32 4294901760, %v6183_v14  ;;  %v6285_v3 = vand.u32 4294901760, %v6284_v45  ;;  %v6287_v32 = vand.u32 4294901760, %v6286_v56  ;;  %v6300_v49 = vld [vmem:[#allocation55_spill] sm:$0xff]  ;;  %v6313_v56 = vld [vmem:[#allocation70_spill] sm:$0xff] }
 0x163   :  { %2465 = vmatmul.mubr.f32.gmra.mrb[2].mxu1 %v6277_v0  ;;  %1046 = vmatprep.mubr.f32.mxu0 %v6278_v40  ;;  %v3430_v25 = vpack.c.bf16 %v6282_v63, %v6280_v6  ;;  %v6289_v20 = vand.u32 4294901760, %v6288_v15  ;;  %v6291_v21 = vand.u32 4294901760, %v6290_v46  ;;  %v6293_v34 = vand.u32 4294901760, %v6292_v51  ;;  %v6305_v6 = vld [vmem:[#allocation61_spill] sm:$0xff]  ;;  %v6307_v63 = vld [vmem:[#allocation63_spill] sm:$0xff]  ;;  %v6318_v46 = vld [vmem:[#allocation66_spill] sm:$0xff] }
 0x164   :  { %3427 = vmatpush1.bf16.msra.mxu1 %v3426_v29  ;;  %2473 = vmatprep.mubr.f32.mxu1 %v6283_v54  ;;  %v3432_v55 = vpack.c.bf16 %v6287_v32, %v6285_v3  ;;  %v6295_v16 = vand.u32 4294901760, %v6294_v9  ;;  %v6296_v14 = vand.u32 4294901760, %v6187_v61  ;;  %v6299_v22 = vand.u32 4294901760, %v6081_v31  ;;  %v6311_v31 = vld [vmem:[#allocation69_spill] sm:$0xff] }
 0x165   :  { %3429 = vmatprep.subr.bf16.mxu1 %v3428_v35  ;;  %3143 = vmatpush1.bf16.msra.mxu0 %v3142_v19  ;;  %v3146_v29 = vpack.c.bf16 %v6291_v21, %v6289_v20  ;;  %v6297_v35 = vand.u32 4294901760, %v6188_v17  ;;  %v6298_v19 = vand.u32 4294901760, %v6189_v24  ;;  %v6301_v0 = vand.u32 4294901760, %v6300_v49  ;;  %v6309_v24 = vld [vmem:[#allocation64_spill] sm:$0xff] }
 0x166   :  { %3145 = vmatprep.subr.bf16.mxu0 %v3144_v5  ;;  %v3148_v1 = vpack.c.bf16 %v6295_v16, %v6293_v34  ;;  %1050 = vmatmul.mubr.f32.gmra.mrb[4].mxu0 %v6296_v14  ;;  %v6302_v40 = vand.u32 4294901760, %v6191_v43  ;;  %v6304_v61 = vand.u32 4294901760, %v6303_v58  ;;  %v6306_v13 = vand.u32 4294901760, %v6305_v6  ;;  %v6323_v16 = vld [vmem:[#allocation71_spill] sm:$0xff] }
 0x167   :  { %2477 = vmatmul.mubr.f32.gmra.mrb[4].mxu1 %v6297_v35  ;;  %1058 = vmatprep.mubr.f32.mxu0 %v6298_v19  ;;  %v3434_v5 = vpack.c.bf16 %v6301_v0, %v6299_v22  ;;  %v6308_v54 = vand.u32 4294901760, %v6307_v63  ;;  %v6310_v45 = vand.u32 4294901760, %v6309_v24  ;;  %v6312_v3 = vand.u32 4294901760, %v6311_v31  ;;  %v6327_v35 = vld [vmem:[#allocation75_spill] sm:$0xff]  ;;  %v6331_v0 = vld [vmem:[#allocation81_spill] sm:$0xff] }
 0x168   :  { %3431 = vmatpush1.bf16.msra.mxu1 %v3430_v25  ;;  %2485 = vmatprep.mubr.f32.mxu1 %v6302_v40  ;;  %v3436_v17 = vpack.c.bf16 %v6306_v13, %v6304_v61  ;;  %v6314_v32 = vand.u32 4294901760, %v6313_v56  ;;  %v6315_v43 = vand.u32 4294901760, %v4697_v62  ;;  %v6317_v20 = vand.u32 4294901760, %v6196_v27  ;;  %v6329_v27 = vld [vmem:[#allocation76_spill] sm:$0xff]  ;;  %v6333_v40 = vld [vmem:[#allocation82_spill] sm:$0xff]  ;;  %v6337_v13 = vld [vmem:[#allocation143_spill] sm:$0xff] }
 0x169   :  { %3433 = vmatprep.subr.bf16.mxu1 %v3432_v55  ;;  %3147 = vmatpush1.bf16.msra.mxu0 %v3146_v29  ;;  %v3150_v25 = vpack.c.bf16 %v6310_v45, %v6308_v54  ;;  %v6316_v55 = vand.u32 4294901760, %v6195_v41  ;;  %v6319_v21 = vand.u32 4294901760, %v6318_v46  ;;  %v6320_v29 = vld [vmem:[#allocation67_spill] sm:$0xff]  ;;  %v6322_v9 = vand.u32 4294901760, %v4759_v33  ;;  %v6345_v56 = vld [vmem:[#allocation85_spill] sm:$0xff] }
 0x16a   :  { %3149 = vmatprep.subr.bf16.mxu0 %v3148_v1  ;;  %v3152_v15 = vpack.c.bf16 %v6314_v32, %v6312_v3  ;;  %1062 = vmatmul.mubr.f32.gmra.mrb[6].mxu0 %v6315_v43  ;;  %v6321_v51 = vand.u32 4294901760, %v6320_v29  ;;  %v6324_v62 = vand.u32 4294901760, %v6323_v16  ;;  %v6325_v1 = vld [vmem:[#allocation73_spill] sm:$0xff]  ;;  %v6328_v19 = vand.u32 4294901760, %v6327_v35  ;;  %v6340_v54 = vld [vmem:[#allocation79_spill] sm:$0xff]  ;;  %v6349_v43 = vld [vmem:[#allocation88_spill] sm:$0xff] }
 0x16b   :  { %2489 = vmatmul.mubr.f32.gmra.mrb[6].mxu1 %v6316_v55  ;;  %1070 = vmatprep.mubr.f32.mxu0 %v6317_v20  ;;  %v6326_v14 = vand.u32 4294901760, %v6325_v1  ;;  %v6330_v22 = vand.u32 4294901760, %v6329_v27  ;;  %v6334_v58 = vand.u32 4294901760, %v6333_v40  ;;  %v6335_v33 = vand.u32 4294901760, %v4763_v28  ;;  %v6343_v31 = vld [vmem:[#allocation83_spill] sm:$0xff]  ;;  %v6351_v46 = vld [vmem:[#allocation93_spill] sm:$0xff] }
 0x16c   :  { %3435 = vmatpush1.bf16.msra.mxu1 %v3434_v5  ;;  %v3438_v34 = vpack.c.bf16 %v6321_v51, %v6319_v21  ;;  %2497 = vmatprep.mubr.f32.mxu1 %v6322_v9  ;;  %v6332_v5 = vand.u32 4294901760, %v6331_v0  ;;  %v6336_v6 = vand.u32 4294901760, %v4788_v42  ;;  %v6341_v24 = vand.u32 4294901760, %v6340_v54  ;;  %v6353_v29 = vld [vmem:[#allocation94_spill] sm:$0xff] }
 0x16d   :  { %3437 = vmatprep.subr.bf16.mxu1 %v3436_v17  ;;  %3151 = vmatpush1.bf16.msra.mxu0 %v3150_v25  ;;  %v3440_v41 = vpack.c.bf16 %v6326_v14, %v6324_v62  ;;  %v3154_v49 = vpack.c.bf16 %v6330_v22, %v6328_v19  ;;  %v6338_v17 = vld [vmem:[#allocation78_spill] sm:$0xff]  ;;  %v6342_v25 = vld [vmem:[#allocation147_spill] sm:$0xff]  ;;  %v6344_v3 = vand.u32 4294901760, %v6343_v31  ;;  %v6346_v28 = vand.u32 4294901760, %v6345_v56 }
 0x16e   :  { %3153 = vmatprep.subr.bf16.mxu0 %v3152_v15  ;;  %v3156_v61 = vpack.c.bf16 %v6334_v58, %v6332_v5  ;;  %1074 = vmatmul.mubr.f32.gmra.mrb[8].mxu0 %v6335_v33  ;;  %v6339_v63 = vand.u32 4294901760, %v6338_v17  ;;  %v6347_v15 = vld [vmem:[#allocation87_spill] sm:$0xff]  ;;  %v6350_v55 = vand.u32 4294901760, %v6349_v43  ;;  %v6352_v21 = vand.u32 4294901760, %v6351_v46  ;;  %v6378_v33 = vld [vmem:[#allocation134_spill] sm:$0xff]  ;;  %v6382_v17 = vld [vmem:[#allocation161_spill] sm:$0xff] }
 0x16f   :  { %2501 = vmatmul.mubr.f32.gmra.mrb[8].mxu1 %v6336_v6  ;;  %1289 = vmatprep.mubr.f32.mxu0 %v6337_v13  ;;  %v3444_v32 = vpack.c.bf16 %v6346_v28, %v6344_v3  ;;  %v6348_v42 = vand.u32 4294901760, %v6347_v15  ;;  %v6354_v51 = vand.u32 4294901760, %v6353_v29  ;;  %v6355_v9 = vand.u32 4294901760, %v6142_v2  ;;  %v6381_v6 = vld [vmem:[#allocation149_spill] sm:$0xff]  ;;  %v6384_v54 = vld [vmem:[#allocation150_spill] sm:$0xff]  ;;  %v6387_v31 = vld [vmem:[#allocation23_spill] sm:$0xff] }
 0x170   :  { %3439 = vmatpush1.bf16.msra.mxu1 %v3438_v34  ;;  %v3442_v45 = vpack.c.bf16 %v6341_v24, %v6339_v63  ;;  %2716 = vmatprep.mubr.f32.mxu1 %v6342_v25  ;;  %v6356_v16 = vand.u32 4294901760, %v6143_v12  ;;  %v6357_v1 = vand.u32 4294901760, %v6144_v47  ;;  %v6358_v14 = vand.u32 4294901760, %v6145_v44  ;;  %v6383_v63 = vld [vmem:[#allocation142_spill] sm:$0xff]  ;;  %v6385_v24 = vld [vmem:[#allocation145_spill] sm:$0xff]  ;;  %v6390_v3 = vld [vmem:[#allocation111_spill] sm:$0xff] }
 0x171   :  { %3441 = vmatprep.subr.bf16.mxu1 %v3440_v41  ;;  %3155 = vmatpush1.bf16.msra.mxu0 %v3154_v49  ;;  %v3158_v20 = vpack.c.bf16 %v6350_v55, %v6348_v42  ;;  %v3160_v34 = vpack.c.bf16 %v6354_v51, %v6352_v21  ;;  %v6359_v35 = vand.u32 4294901760, %v6146_v59  ;;  %v6360_v19 = vand.u32 4294901760, %v6147_v53  ;;  %v6394_v56 = vld [vmem:[#allocation119_spill] sm:$0xff]  ;;  %v6398_v15 = vld [vmem:[#allocation152_spill] sm:$0xff]  ;;  %v6399_v42 = vld [vmem:[#allocation153_spill] sm:$0xff] }
 0x172   :  { %3157 = vmatprep.subr.bf16.mxu0 %v3156_v61  ;;  %v3446_v62 = vpack.c.bf16 %v6356_v16, %v6355_v9  ;;  %v3448_v41 = vpack.c.bf16 %v6358_v14, %v6357_v1  ;;  %v6361_v22 = vand.u32 4294901760, %v6148_v60  ;;  %v6362_v2 = vand.u32 4294901760, %v6149_v4  ;;  %v6395_v28 = vld [vmem:[#allocation35_spill] sm:$0xff]  ;;  %v6400_v43 = vld [vmem:[#allocation126_spill] sm:$0xff]  ;;  %v6401_v55 = vld [vmem:[#allocation41_spill] sm:$0xff] }
 0x173   :  { %v3162_v27 = vpack.c.bf16 %v6360_v19, %v6359_v35  ;;  %v6363_v12 = vand.u32 4294901760, %v6150_v52  ;;  %v6364_v0 = vand.u32 4294901760, %v6151_v10  ;;  %v6365_v44 = vand.u32 4294901760, %v5999_v11  ;;  %v6403_v46 = vld [vmem:[#allocation47_spill] sm:$0xff]  ;;  %v6405_v29 = vld [vmem:[#allocation56_spill] sm:$0xff]  ;;  %v6408_v9 = vld [vmem:[#allocation157_spill] sm:$0xff] }
 0x174   :  { %3443 = vmatpush1.bf16.msra.mxu1 %v3442_v45  ;;  %v3164_v49 = vpack.c.bf16 %v6362_v2, %v6361_v22  ;;  %v6366_v59 = vand.u32 4294901760, %v6000_v23  ;;  %v6367_v5 = vand.u32 4294901760, %v6003_v37  ;;  %v6368_v60 = vand.u32 4294901760, %v6005_v18  ;;  %v6373_v23 = vld [vmem:[#allocation14_spill] sm:$0xff]  ;;  %v6375_v37 = vld [vmem:[#allocation128_spill] sm:$0xff]  ;;  %v6386_v45 = vld [vmem:[#allocation109_spill] sm:$0xff] }
 0x175   :  { %3445 = vmatprep.subr.bf16.mxu1 %v3444_v32  ;;  %3159 = vmatpush1.bf16.msra.mxu0 %v3158_v20  ;;  %v3450_v47 = vpack.c.bf16 %v6364_v0, %v6363_v12  ;;  %v6369_v4 = vand.u32 4294901760, %v6011_v57  ;;  %v6370_v52 = vand.u32 4294901760, %v6015_v36  ;;  %v6371_v10 = vand.u32 4294901760, %v6008_v30  ;;  %v6374_v18 = vld [vmem:[#allocation18_spill] sm:$0xff]  ;;  %v6377_v36 = vld [vmem:[#allocation132_spill] sm:$0xff]  ;;  %v6404_v21 = vld [vmem:[#allocation51_spill] sm:$0xff] }
 0x176   :  { %3161 = vmatprep.subr.bf16.mxu0 %v3160_v34  ;;  %v3452_v53 = vpack.c.bf16 %v6366_v59, %v6365_v44  ;;  %v3166_v40 = vpack.c.bf16 %v6368_v60, %v6367_v5  ;;  %v6372_v61 = vand.u32 4294901760, %v6010_v39  ;;  %v6376_v57 = vld [vmem:[#allocation26_spill] sm:$0xff]  ;;  %v6397_v32 = vld [vmem:[#allocation44_spill] sm:$0xff]  ;;  %v6406_v51 = vld [vmem:[#allocation155_spill] sm:$0xff] }
 0x177   :  { %v3168_v58 = vpack.c.bf16 %v6370_v52, %v6369_v4  ;;  %v6379_v30 = vld [vmem:[#allocation146_spill] sm:$0xff]  ;;  %v6407_v34 = vld [vmem:[#allocation156_spill] sm:$0xff]  ;;  %v6409_v16 = vld [vmem:[#allocation53_spill] sm:$0xff] }
 0x178   :  { %3447 = vmatpush1.bf16.msra.mxu1 %v3446_v62  ;;  %v3454_v11 = vpack.c.bf16 %v6372_v61, %v6371_v10  ;;  %v6380_v39 = vld [vmem:[#allocation54_spill] sm:$0xff]  ;;  %v6411_v1 = vld [vmem:[#allocation60_spill] sm:$0xff]  ;;  %v6414_v35 = vld [vmem:[#allocation159_spill] sm:$0xff] }
 0x179   :  { %3449 = vmatprep.subr.bf16.mxu1 %v3448_v41  ;;  %3163 = vmatpush1.bf16.msra.mxu0 %v3162_v27  ;;  %v6402_v20 = vld [vmem:[#allocation130_spill] sm:$0xff]  ;;  %v6413_v41 = vld [vmem:[#allocation68_spill] sm:$0xff]  ;;  %v6416_v27 = vld [vmem:[#allocation65_spill] sm:$0xff] }
 0x17a   :  { %3165 = vmatprep.subr.bf16.mxu0 %v3164_v49  ;;  %v6410_v62 = vld [vmem:[#allocation158_spill] sm:$0xff]  ;;  %v6415_v19 = vld [vmem:[#allocation160_spill] sm:$0xff]  ;;  %v6420_v12 = vld [vmem:[#allocation77_spill] sm:$0xff] }
 0x17b   :  { %v6412_v14 = vld [vmem:[#allocation62_spill] sm:$0xff]  ;;  %v6417_v22 = vld [vmem:[#allocation72_spill] sm:$0xff]  ;;  %v6424_v59 = vld [vmem:[#allocation89_spill] sm:$0xff] }
 0x17c   :  { %3451 = vmatpush1.bf16.msra.mxu1 %v3450_v47  ;;  %v6418_v2 = vld [vmem:[#allocation74_spill] sm:$0xff]  ;;  %v6419_v49 = vld [vmem:[#allocation80_spill] sm:$0xff]  ;;  %v6428_v5 = vld [vmem:[#allocation101_spill] sm:$0xff] }
 0x17d   :  { %3453 = vmatprep.subr.bf16.mxu1 %v3452_v53  ;;  %3167 = vmatpush1.bf16.msra.mxu0 %v3166_v40  ;;  %v6421_v0 = vld [vmem:[#allocation84_spill] sm:$0xff]  ;;  %v6422_v47 = vld [vmem:[#allocation86_spill] sm:$0xff]  ;;  %v6432_v52 = vld [vmem:[#allocation113_spill] sm:$0xff] }
 0x17e   :  { %3169 = vmatprep.subr.bf16.mxu0 %v3168_v58  ;;  %v6423_v44 = vld [vmem:[#allocation92_spill] sm:$0xff]  ;;  %v6426_v53 = vld [vmem:[#allocation98_spill] sm:$0xff]  ;;  %v6434_v10 = vld [vmem:[#allocation121_spill] sm:$0xff] }
 0x17f   :  { %v6429_v60 = vld [vmem:[#allocation108_spill] sm:$0xff]  ;;  %v6430_v40 = vld [vmem:[#allocation110_spill] sm:$0xff]  ;;  %v6435_v61 = vld [vmem:[#allocation127_spill] sm:$0xff] }
 0x180   :  { %3455 = vmatpush1.bf16.msra.mxu1 %v3454_v11  ;;  %v6431_v4 = vld [vmem:[#allocation116_spill] sm:$0xff] }
 0x181   :  { %3457 = vmatprep.subr.bf16.mxu1 %v6373_v23  ;;  %3171 = vmatpush1.bf16.msra.mxu0 %v6374_v18  ;;  %v6433_v58 = vld [vmem:[#allocation120_spill] sm:$0xff]  ;;  %v6437_v23 = vld [vmem:[#allocation131_spill] sm:$0xff]  ;;  %v6438_v18 = vld [vmem:[#allocation133_spill] sm:$0xff] }
 0x182   :  { %3173 = vmatprep.subr.bf16.mxu0 %v6375_v37  ;;  %v6436_v11 = vld [vmem:[#allocation124_spill] sm:$0xff]  ;;  %v6439_v37 = vld [vmem:[#allocation137_spill] sm:$0xff] }
 0x184   :  { %3459 = vmatpush1.bf16.msra.mxu1 %v6376_v57  ;;  %v6440_v57 = vld [vmem:[#allocation135_spill] sm:$0xff] }
 0x185   :  { %3461 = vmatprep.subr.bf16.mxu1 %v6377_v36  ;;  %3175 = vmatpush1.bf16.msra.mxu0 %v6378_v33  ;;  %v6441_v36 = vld [vmem:[#allocation139_spill] sm:$0xff]  ;;  %v6442_v33 = vld [vmem:[#allocation140_spill] sm:$0xff] }
 0x186   :  { %3177 = vmatprep.subr.bf16.mxu0 %v6379_v30  ;;  %v6443_v30 = vld [vmem:[#allocation141_spill] sm:$0xff] }
 0x188   :  { %3463 = vmatpush1.bf16.msra.mxu1 %v6380_v39 }
 0x189   :  { %3465 = vmatprep.subr.bf16.mxu1 %v6381_v6  ;;  %3179 = vmatpush1.bf16.msra.mxu0 %v6382_v17 }
 0x18a   :  { %3181 = vmatprep.subr.bf16.mxu0 %v6166_v8  ;;  %v6388_v8 = vld [vmem:[#allocation27_spill] sm:$0xff] }
 0x18c   :  { %3467 = vmatpush1.bf16.msra.mxu1 %v4969_v50  ;;  %1291 = vmatmul.mubr.f32.vlgmr.msra.gmra.mrb[0].mxu0 %v6383_v63  ;;  %v6389_v50 = vld [vmem:[#allocation32_spill] sm:$0xff] }
 0x18d   :  { %3469 = vmatprep.subr.bf16.mxu1 %v6169_v48  ;;  %3183 = vmatpush1.bf16.msra.mxu0 %v6170_v26  ;;  %v6391_v48 = vld [vmem:[#allocation114_spill] sm:$0xff]  ;;  %v6392_v26 = vld [vmem:[#allocation117_spill] sm:$0xff] }
 0x18e   :  { %3185 = vmatprep.subr.bf16.mxu0 %v6171_v38  ;;  %1297 = vmatprep.mubr.f32.mxu0 %v6384_v54  ;;  %v6393_v38 = vld [vmem:[#allocation30_spill] sm:$0xff] }
 0x18f   :  { %2718 = vmatmul.mubr.f32.vlgmr.msra.gmra.mrb[0].mxu1 %v6385_v24 }
 0x190   :  { %3471 = vmatpush1.bf16.msra.mxu1 %v6174_v7  ;;  %2724 = vmatprep.mubr.f32.mxu1 %v6386_v45  ;;  %v6396_v7 = vld [vmem:[#allocation38_spill] sm:$0xff] }
 0x191   :  { %3473 = vmatprep.subr.bf16.mxu1 %v6387_v31  ;;  %3187 = vmatpush1.bf16.msra.mxu0 %v6388_v8 }
 0x192   :  { %3189 = vmatprep.subr.bf16.mxu0 %v6389_v50  ;;  %1299 = vmatmul.mubr.f32.gmra.mrb[2].mxu0 %v6390_v3 }
 0x193   :  { %2726 = vmatmul.mubr.f32.gmra.mrb[2].mxu1 %v6391_v48  ;;  %1305 = vmatprep.mubr.f32.mxu0 %v6392_v26 }
 0x194   :  { %3475 = vmatpush1.bf16.msra.mxu1 %v6393_v38  ;;  %2732 = vmatprep.mubr.f32.mxu1 %v6394_v56 }
 0x195   :  { %3477 = vmatprep.subr.bf16.mxu1 %v6395_v28  ;;  %3191 = vmatpush1.bf16.msra.mxu0 %v6396_v7 }
 0x196   :  { %3193 = vmatprep.subr.bf16.mxu0 %v6397_v32  ;;  %1307 = vmatmul.mubr.f32.gmra.mrb[4].mxu0 %v6398_v15 }
 0x197   :  { %2734 = vmatmul.mubr.f32.gmra.mrb[4].mxu1 %v6399_v42  ;;  %1313 = vmatprep.mubr.f32.mxu0 %v6400_v43 }
 0x198   :  { %3479 = vmatpush1.bf16.msra.mxu1 %v6401_v55  ;;  %2740 = vmatprep.mubr.f32.mxu1 %v6402_v20 }
 0x199   :  { %3481 = vmatprep.subr.bf16.mxu1 %v6403_v46  ;;  %3195 = vmatpush1.bf16.msra.mxu0 %v6404_v21 }
 0x19a   :  { %3197 = vmatprep.subr.bf16.mxu0 %v6405_v29  ;;  %1315 = vmatmul.mubr.f32.gmra.mrb[6].mxu0 %v6406_v51 }
 0x19b   :  { %2742 = vmatmul.mubr.f32.gmra.mrb[6].mxu1 %v6407_v34  ;;  %1321 = vmatprep.mubr.f32.mxu0 %v6408_v9 }
 0x19c   :  { %3483 = vmatpush1.bf16.msra.mxu1 %v6409_v16  ;;  %2748 = vmatprep.mubr.f32.mxu1 %v6410_v62 }
 0x19d   :  { %3485 = vmatprep.subr.bf16.mxu1 %v6411_v1  ;;  %3199 = vmatpush1.bf16.msra.mxu0 %v6412_v14 }
 0x19e   :  { %3201 = vmatprep.subr.bf16.mxu0 %v6413_v41  ;;  %1323 = vmatmul.mubr.f32.gmra.mrb[8].mxu0 %v6414_v35 }
 0x19f   :  { %2750 = vmatmul.mubr.f32.gmra.mrb[8].mxu1 %v6415_v19  ;;  %1442 = vmatprep.mubr.f32.mxu0 %v6337_v13  ;;  %v6425_v13 = vld [vmem:[#allocation96_spill] sm:$0xff] }
 0x1a0   :  { %3487 = vmatpush1.bf16.msra.mxu1 %v6416_v27  ;;  %2869 = vmatprep.mubr.f32.mxu1 %v6342_v25  ;;  %v6427_v25 = vld [vmem:[#allocation104_spill] sm:$0xff] }
 0x1a1   :  { %3489 = vmatprep.subr.bf16.mxu1 %v6417_v22  ;;  %3203 = vmatpush1.bf16.msra.mxu0 %v6418_v2 }
 0x1a2   :  { %3205 = vmatprep.subr.bf16.mxu0 %v6419_v49 }
 0x1a4   :  { %3491 = vmatpush1.bf16.msra.mxu1 %v6420_v12 }
 0x1a5   :  { %3493 = vmatprep.subr.bf16.mxu1 %v6421_v0  ;;  %3207 = vmatpush1.bf16.msra.mxu0 %v6422_v47 }
 0x1a6   :  { %3209 = vmatprep.subr.bf16.mxu0 %v6423_v44 }
 0x1a8   :  { %3495 = vmatpush1.bf16.msra.mxu1 %v6424_v59 }
 0x1a9   :  { %3497 = vmatprep.subr.bf16.mxu1 %v6425_v13  ;;  %3211 = vmatpush1.bf16.msra.mxu0 %v6426_v53 }
 0x1aa   :  { %3213 = vmatprep.subr.bf16.mxu0 %v6427_v25 }
 0x1ac   :  { %3499 = vmatpush1.bf16.msra.mxu1 %v6428_v5 }
 0x1ad   :  { %3501 = vmatprep.subr.bf16.mxu1 %v6429_v60  ;;  %3215 = vmatpush1.bf16.msra.mxu0 %v6430_v40 }
 0x1ae   :  { %3217 = vmatprep.subr.bf16.mxu0 %v6431_v4 }
 0x1b0   :  { %3503 = vmatpush1.bf16.msra.mxu1 %v6432_v52 }
 0x1b1   :  { %3505 = vmatprep.subr.bf16.mxu1 %v6433_v58  ;;  %3219 = vmatpush1.bf16.msra.mxu0 %v6434_v10 }
 0x1b2   :  { %3221 = vmatprep.subr.bf16.mxu0 %v6435_v61 }
 0x1b4   :  { %3507 = vmatpush1.bf16.msra.mxu1 %v6436_v11 }
 0x1b5   :  { %3509 = vmatprep.subr.bf16.mxu1 %v6437_v23  ;;  %3223 = vmatpush1.bf16.msra.mxu0 %v6438_v18 }
 0x1b6   :  { %3225 = vmatprep.subr.bf16.mxu0 %v6439_v37 }
 0x1b8   :  { %3511 = vmatpush1.bf16.msra.mxu1 %v6440_v57 }
 0x1b9   :  { %3513 = vmatprep.subr.bf16.mxu1 %v6441_v36  ;;  %3227 = vmatpush1.bf16.msra.mxu0 %v6442_v33 }
 0x1bc   :  { %3515 = vmatpush1.bf16.msra.mxu1 %v6443_v30  ;;  %1444 = vmatmul.mubr.f32.vlgmr.msra.gmra.mrb[0].mxu0 %v6383_v63 }
 0x1bd   :  { %1450 = vmatprep.mubr.f32.mxu0 %v6384_v54 }
 0x1bf   :  { %2871 = vmatmul.mubr.f32.vlgmr.msra.gmra.mrb[0].mxu1 %v6385_v24 }
 0x1c0   :  { %2877 = vmatprep.mubr.f32.mxu1 %v6386_v45  ;;  %1452 = vmatmul.mubr.f32.gmra.mrb[2].mxu0 %v6390_v3 }
 0x1c1   :  { %1458 = vmatprep.mubr.f32.mxu0 %v6392_v26 }
 0x1c3   :  { %2879 = vmatmul.mubr.f32.gmra.mrb[2].mxu1 %v6391_v48 }
 0x1c4   :  { %2885 = vmatprep.mubr.f32.mxu1 %v6394_v56  ;;  %1460 = vmatmul.mubr.f32.gmra.mrb[4].mxu0 %v6398_v15 }
 0x1c5   :  { %1466 = vmatprep.mubr.f32.mxu0 %v6400_v43 }
 0x1c7   :  { %2887 = vmatmul.mubr.f32.gmra.mrb[4].mxu1 %v6399_v42 }
 0x1c8   :  { %2893 = vmatprep.mubr.f32.mxu1 %v6402_v20  ;;  %1468 = vmatmul.mubr.f32.gmra.mrb[6].mxu0 %v6406_v51 }
 0x1c9   :  { %1474 = vmatprep.mubr.f32.mxu0 %v6408_v9 }
 0x1cb   :  { %2895 = vmatmul.mubr.f32.gmra.mrb[6].mxu1 %v6407_v34 }
 0x1cc   :  { %2901 = vmatprep.mubr.f32.mxu1 %v6410_v62  ;;  %1476 = vmatmul.mubr.f32.gmra.mrb[8].mxu0 %v6414_v35 }
 0x1cf   :  { %2903 = vmatmul.mubr.f32.gmra.mrb[8].mxu1 %v6415_v19 }
 0x28f   :  { %v1445_v39 = vpop.f32.mrb[0].mxu0 }
 0x290   :  { %1482 = vst [vmem:[#allocation8] sm:$0xff] %v1445_v39  ;;  %v1447_v6 = vpop.f32.mrb[1].mxu0 }
 0x291   :  { %1483 = vst [vmem:[#allocation8 + $0x8] sm:$0xff] %v1447_v6 }
 0x292   :  { %v2872_v17 = vpop.f32.mrb[0].mxu1 }
 0x293   :  { %2910 = vst [vmem:[#allocation8 + $0x50] sm:$0xff] %v2872_v17  ;;  %v2874_v63 = vpop.f32.mrb[1].mxu1  ;;  %v1453_v54 = vpop.f32.mrb[2].mxu0 }
 0x294   :  { %2911 = vst [vmem:[#allocation8 + $0x58] sm:$0xff] %v2874_v63  ;;  %1484 = vst [vmem:[#allocation8 + $0x10] sm:$0xff] %v1453_v54  ;;  %v1455_v24 = vpop.f32.mrb[3].mxu0 }
 0x295   :  { %1485 = vst [vmem:[#allocation8 + $0x18] sm:$0xff] %v1455_v24 }
 0x296   :  { %v2880_v45 = vpop.f32.mrb[2].mxu1 }
 0x297   :  { %2912 = vst [vmem:[#allocation8 + $0x60] sm:$0xff] %v2880_v45  ;;  %v2882_v31 = vpop.f32.mrb[3].mxu1  ;;  %v1461_v8 = vpop.f32.mrb[4].mxu0 }
 0x298   :  { %2913 = vst [vmem:[#allocation8 + $0x68] sm:$0xff] %v2882_v31  ;;  %1486 = vst [vmem:[#allocation8 + $0x20] sm:$0xff] %v1461_v8  ;;  %v1463_v50 = vpop.f32.mrb[5].mxu0 }
 0x299   :  { %1487 = vst [vmem:[#allocation8 + $0x28] sm:$0xff] %v1463_v50 }
 0x29a   :  { %v2888_v3 = vpop.f32.mrb[4].mxu1 }
 0x29b   :  { %2914 = vst [vmem:[#allocation8 + $0x70] sm:$0xff] %v2888_v3  ;;  %v2890_v48 = vpop.f32.mrb[5].mxu1  ;;  %v1469_v26 = vpop.f32.mrb[6].mxu0 }
 0x29c   :  { %2915 = vst [vmem:[#allocation8 + $0x78] sm:$0xff] %v2890_v48  ;;  %1488 = vst [vmem:[#allocation8 + $0x30] sm:$0xff] %v1469_v26  ;;  %v1471_v38 = vpop.f32.mrb[7].mxu0 }
 0x29d   :  { %1489 = vst [vmem:[#allocation8 + $0x38] sm:$0xff] %v1471_v38 }
 0x29e   :  { %v2896_v56 = vpop.f32.mrb[6].mxu1 }
 0x29f   :  { %2916 = vst [vmem:[#allocation8 + $0x80] sm:$0xff] %v2896_v56  ;;  %v2898_v28 = vpop.f32.mrb[7].mxu1  ;;  %v1477_v7 = vpop.f32.mrb[8].mxu0 }
 0x2a0   :  { %2917 = vst [vmem:[#allocation8 + $0x88] sm:$0xff] %v2898_v28  ;;  %1490 = vst [vmem:[#allocation8 + $0x40] sm:$0xff] %v1477_v7  ;;  %v1479_v32 = vpop.f32.mrb[9].mxu0 }
 0x2a1   :  { %1491 = vst [vmem:[#allocation8 + $0x48] sm:$0xff] %v1479_v32 }
 0x2a2   :  { %v2904_v15 = vpop.f32.mrb[8].mxu1 }
 0x2a3   :  { %2918 = vst [vmem:[#allocation8 + $0x90] sm:$0xff] %v2904_v15  ;;  %v2906_v42 = vpop.f32.mrb[9].mxu1 }
 0x2a4   :  { %2919 = vst [vmem:[#allocation8 + $0x98] sm:$0xff] %v2906_v42 }
 0x2a5   :  { %3709 = shalt.err (!%p3706_p0)
}
 0x2a6   :  { %s3710_s29 = scalar_lea.hbm %s5397_s3, 2560 }
 0x2a7   :  { %p3711_p1 = scmp.ne.s32.totalorder %s5397_s3, %s3710_s29  ;;  %p3714_p2 = scmp.lt.u32.totalorder %s3710_s29, %s5397_s3 }
 0x2a9   :  { %p3716_p3 = pnand %p3714_p2, %p3711_p1 }
 0x2ab   :  { %3719 = shalt.err (!%p3716_p3)
}
 0x2ac   :  { %2931 = dma.vmem_to_hbm [thread:$0]  %s2926_s25, 2560, %s5397_s3, [#allocation4], %s3727_s22, %s3727_s22, %s3728_s23  }
 0x2ad   :  { %3724 = dma.done.wait [#allocation4], 2560  }
 0x2ae   :  { %3725 = vsyncadd [#allocation4], 4294964736 }
 0x2af   :  { %2935 = vsyncpa [#allocation3], 1 }
 0x2b0   :  { %2936 = vsyncpa [#allocation6], 1 }
 0x2b1   :  { %2937 = vsyncpa [#allocation4], 1 }

</bundles_post_ra>
